<compile_context>
chip_gen: v6e
topology: v6e:2x2x1
jax: 0.10.0
libtpu: 0.0.40
codegen_flags: <defaults>
</compile_context>

<pallas_src>
import jax
import jax.numpy as jnp
from jax import lax
from jax.experimental import pallas as pl
from jax.experimental.pallas import tpu as pltpu

BATCH_SIZE = 1
EMBED_SIZE = 512
NUM_HEADS = 8
DK = EMBED_SIZE // NUM_HEADS          # 64
DV = EMBED_SIZE // NUM_HEADS          # 64
FF_DIM = 2048
LN_EPS = 1e-5
SCALE = 1.0 / float(DK) ** 0.5
NEG_INF = -10000.0


def _layernorm(x, gamma, beta):
    mu = jnp.mean(x, axis=-1, keepdims=True)
    var = jnp.mean((x - mu) ** 2, axis=-1, keepdims=True)
    return (x - mu) * lax.rsqrt(var + LN_EPS) * gamma + beta


# ---------------------------------------------------------------------------
# Kernel 1: K/V projections, computed ONCE over the full sequence (hoisted out
# of the per-query-tile grid so they are not redone grid_size times).
# ---------------------------------------------------------------------------
def kv_proj_kernel(x_ref, wk_ref, bk_ref, wv_ref, bv_ref, k_ref, v_ref):
    xb = x_ref[...]                                    # (tn, E) bf16
    k_ref[...] = (jnp.dot(xb, wk_ref[...], preferred_element_type=jnp.float32)
                  + bk_ref[...]).astype(jnp.bfloat16)
    v_ref[...] = (jnp.dot(xb, wv_ref[...], preferred_element_type=jnp.float32)
                  + bv_ref[...]).astype(jnp.bfloat16)


# ---------------------------------------------------------------------------
# Kernel 2: fused attention (Q proj + SDPA + Wo + LN1) + FFN (+ LN2) over a
# query-row tile.  K/V arrive pre-projected in bf16.
# ---------------------------------------------------------------------------
def enc_layer_kernel(x_ref, mask_ref, k_ref, v_ref,
                     wq_ref, bq_ref, wo_ref, bo_ref, g1_ref, be1_ref,
                     w1_ref, b1_ref, w2_ref, b2_ref, g2_ref, be2_ref,
                     o_ref, q_scr, z_scr):
    x = x_ref[...]                                     # (tm, E) f32 query tile
    mask = mask_ref[...] != 0                          # (tm, S) bool (from int8)

    # Q projection (bf16 MXU, f32 acc); 1/sqrt(DK) folded into q once.
    q = jnp.dot(x.astype(jnp.bfloat16), wq_ref[...],
                preferred_element_type=jnp.float32) + bq_ref[...]
    q_scr[...] = (q * SCALE).astype(jnp.bfloat16)

    # Attention: two heads (2*64 = 128 lanes) per fori_loop iteration so every
    # q/k/v pair slice and every z_scr store is 128-lane dense and 128-aligned.
    def pair_body(p, carry):
        off = pl.multiple_of(p * 2 * DK, 128)
        qp = q_scr[:, pl.ds(off, 2 * DK)]              # (tm, 128) bf16
        kp = k_ref[:, pl.ds(off, 2 * DK)]              # (S,  128) bf16
        vp = v_ref[:, pl.ds(off, 2 * DK)]              # (S,  128) bf16

        def softmax_head(qh, kh):
            # q @ k^T with no explicit transpose: contract dim 1 of both.
            s = lax.dot_general(qh, kh, (((1,), (1,)), ((), ())),
                                preferred_element_type=jnp.float32)
            s = jnp.where(mask, jnp.float32(NEG_INF), s)   # torch masked_fill
            s = s - jnp.max(s, axis=-1, keepdims=True)     # stable softmax
            e = jnp.exp(s)
            return (e * pl.reciprocal(jnp.sum(e, axis=-1, keepdims=True),
                                      approx=True)).astype(jnp.bfloat16)

        z0 = jnp.dot(softmax_head(qp[:, :DK], kp[:, :DK]), vp[:, :DK],
                     preferred_element_type=jnp.float32)
        z1 = jnp.dot(softmax_head(qp[:, DK:], kp[:, DK:]), vp[:, DK:],
                     preferred_element_type=jnp.float32)
        # One lane-dense (tm, 128) store at a 128-aligned offset per pair.
        z_scr[:, pl.ds(off, 2 * DK)] = jnp.concatenate(
            [z0, z1], axis=-1).astype(jnp.bfloat16)
        return carry

    lax.fori_loop(0, NUM_HEADS // 2, pair_body, 0)

    z = jnp.dot(z_scr[...], wo_ref[...],
                preferred_element_type=jnp.float32) + bo_ref[...]
    # dropout is identity in inference; TODO(synk): train-mode dropout not reproduced
    a = _layernorm(x + z, g1_ref[...], be1_ref[...])   # attn residual + LN (f32)

    h1 = jnp.maximum(jnp.dot(a.astype(jnp.bfloat16), w1_ref[...],
                             preferred_element_type=jnp.float32) + b1_ref[...],
                     0.0)                              # ReLU
    h2 = jnp.dot(h1.astype(jnp.bfloat16), w2_ref[...],
                 preferred_element_type=jnp.float32) + b2_ref[...]
    o_ref[...] = _layernorm(a + h2, g2_ref[...], be2_ref[...])


# ---------------------------------------------------------------------------
# Wrapper
# ---------------------------------------------------------------------------
def _choose_tile(S, block_rows):
    # Largest tile <= block_rows that divides S (avoids garbage tail rows) and
    # is a multiple of 8 (sublane constraint).
    for cand in (block_rows, 256, 128, 64, 32, 16, 8):
        if cand <= S and S % cand == 0 and cand % 8 == 0:
            return cand
    return S


def _vmem_limit_bytes():
    # ~48 MiB on 64 MiB (v7x) parts, ~96 MiB on 128 MiB (v5e/v6e) parts.
    try:
        cap = pltpu.get_tpu_info().vmem_capacity_bytes
    except Exception:
        cap = 64 * 1024 * 1024
    return int(min(100 * 1024 * 1024, (cap * 3) // 4))


def _const_spec(shape):
    return pl.BlockSpec(shape, lambda i, n=len(shape): (0,) * n)


def enc_layer_forward(x, mask, params, block_rows=256):
    """x: (1, S, E) f32, mask: (1, 1, S, S) bool-like. Returns (1, S, E) f32."""
    S = x.shape[1]
    E, FF = EMBED_SIZE, FF_DIM
    x2 = x.reshape(S, E).astype(jnp.float32)
    x_bf = x2.astype(jnp.bfloat16)                     # K/V operand, bf16 from wrapper
    m8 = mask.reshape(S, S).astype(jnp.int8)           # 4x less O(S^2) mask DMA

    wb = lambda name: params[name].astype(jnp.bfloat16)
    vmem_limit = _vmem_limit_bytes()
    tile = _choose_tile(S, block_rows)

    # --- K/V projection: once over the full sequence -------------------------
    kv_cost = pl.CostEstimate(
        flops=4 * S * E * E, transcendentals=0,
        bytes_accessed=2 * S * E + 2 * (2 * E * E) + 2 * (2 * S * E))
    k_bf, v_bf = pl.pallas_call(
        kv_proj_kernel,
        out_shape=(jax.ShapeDtypeStruct((S, E), jnp.bfloat16),
                   jax.ShapeDtypeStruct((S, E), jnp.bfloat16)),
        grid=(pl.cdiv(S, tile),),
        in_specs=[pl.BlockSpec((tile, E), lambda i: (i, 0)),
                  _const_spec((E, E)), _const_spec((1, E)),
                  _const_spec((E, E)), _const_spec((1, E))],
        out_specs=(pl.BlockSpec((tile, E), lambda i: (i, 0)),
                   pl.BlockSpec((tile, E), lambda i: (i, 0))),
        compiler_params=pltpu.CompilerParams(
            dimension_semantics=("parallel",),
            vmem_limit_bytes=vmem_limit),
        cost_estimate=kv_cost,
    )(x_bf, wb("wk"), params["bk"], wb("wv"), params["bv"])

    # --- fused attention + FFN over query-row tiles --------------------------
    tm = tile
    grid = (pl.cdiv(S, tm),)

    args = (x2, m8, k_bf, v_bf,
            wb("wq"), params["bq"], wb("wo"), params["bo"],
            params["ln1_g"], params["ln1_b"],
            wb("w1"), params["b1"], wb("w2"), params["b2"],
            params["ln2_g"], params["ln2_b"])

    in_specs = [
        pl.BlockSpec((tm, E), lambda i: (i, 0)),       # query-row tile (f32)
        pl.BlockSpec((tm, S), lambda i: (i, 0)),       # mask rows (int8)
    ] + [_const_spec(a.shape) for a in args[2:]]       # K/V + weights + biases + LN

    flops = 4 * S * E * E + 4 * S * S * E + 4 * S * E * FF
    bytes_accessed = (2 * (2 * E * E + 2 * E * FF)     # bf16 wq, wo, w1, w2
                      + 2 * (2 * S * E)                # bf16 K, V
                      + 4 * S * E                      # f32 x
                      + S * S                          # int8 mask
                      + 4 * S * E)                     # f32 out
    cost = pl.CostEstimate(
        flops=flops,
        transcendentals=NUM_HEADS * S * S + NUM_HEADS * S + 2 * S,
        bytes_accessed=bytes_accessed)

    out = pl.pallas_call(
        enc_layer_kernel,
        out_shape=jax.ShapeDtypeStruct((S, E), jnp.float32),
        grid=grid,
        in_specs=in_specs,
        out_specs=pl.BlockSpec((tm, E), lambda i: (i, 0)),
        scratch_shapes=[pltpu.VMEM((tm, E), jnp.bfloat16),   # scaled Q
                        pltpu.VMEM((tm, E), jnp.bfloat16)],  # per-head outputs
        compiler_params=pltpu.CompilerParams(
            dimension_semantics=("parallel",),         # shard tiles across TCs
            vmem_limit_bytes=vmem_limit),
        cost_estimate=cost,
    )(*args)
    return out.reshape(1, S, E)


# ---------------------------------------------------------------------------
# Params + pure-JAX reference + test
# ---------------------------------------------------------------------------
def init_params(key):
    ks = jax.random.split(key, 12)
    def lin(k, fan_in, fan_out):
        w = 0.02 * jax.random.normal(k, (fan_in, fan_out), jnp.float32)
        b = jnp.zeros((1, fan_out), jnp.float32)
        return w, b
    wq, bq = lin(ks[0], EMBED_SIZE, NUM_HEADS * DK)
    wk, bk = lin(ks[1], EMBED_SIZE, NUM_HEADS * DK)
    wv, bv = lin(ks[2], EMBED_SIZE, NUM_HEADS * DV)
    wo, bo = lin(ks[3], NUM_HEADS * DV, EMBED_SIZE)
    w1, b1 = lin(ks[4], EMBED_SIZE, FF_DIM)
    w2, b2 = lin(ks[5], FF_DIM, EMBED_SIZE)
    bq = 0.01 * jax.random.normal(ks[6], (1, NUM_HEADS * DK), jnp.float32)
    bo = 0.01 * jax.random.normal(ks[7], (1, EMBED_SIZE), jnp.float32)
    b1 = 0.01 * jax.random.normal(ks[8], (1, FF_DIM), jnp.float32)
    b2 = 0.01 * jax.random.normal(ks[9], (1, EMBED_SIZE), jnp.float32)
    return dict(
        wq=wq, bq=bq, wk=wk, bk=bk, wv=wv, bv=bv, wo=wo, bo=bo,
        w1=w1, b1=b1, w2=w2, b2=b2,
        ln1_g=jnp.ones((1, EMBED_SIZE), jnp.float32),
        ln1_b=jnp.zeros((1, EMBED_SIZE), jnp.float32),
        ln2_g=jnp.ones((1, EMBED_SIZE), jnp.float32),
        ln2_b=jnp.zeros((1, EMBED_SIZE), jnp.float32),
    )


def reference_forward(x, mask, p):
    """Pure-JAX f32 reference matching the PyTorch module (eval mode)."""
    S = x.shape[1]
    x2 = x.reshape(S, EMBED_SIZE)
    m2 = mask.reshape(S, S)
    q = (x2 @ p["wq"] + p["bq"]).reshape(S, NUM_HEADS, DK).transpose(1, 0, 2)
    k = (x2 @ p["wk"] + p["bk"]).reshape(S, NUM_HEADS, DK).transpose(1, 0, 2)
    v = (x2 @ p["wv"] + p["bv"]).reshape(S, NUM_HEADS, DV).transpose(1, 0, 2)
    a = jnp.einsum("hqd,hkd->hqk", q, k) / jnp.sqrt(jnp.float32(DK))
    a = jnp.where(m2[None], -10000.0, a)
    a = jax.nn.softmax(a, axis=-1)
    z = jnp.einsum("hqk,hkd->hqd", a, v).transpose(1, 0, 2).reshape(S, EMBED_SIZE)
    z = z @ p["wo"] + p["bo"]
    def ln(t, g, b):
        mu = jnp.mean(t, -1, keepdims=True)
        var = jnp.mean((t - mu) ** 2, -1, keepdims=True)
        return (t - mu) * jax.lax.rsqrt(var + LN_EPS) * g + b
    a1 = ln(x2 + z, p["ln1_g"], p["ln1_b"])
    h = jnp.maximum(a1 @ p["w1"] + p["b1"], 0.0) @ p["w2"] + p["b2"]
    return ln(a1 + h, p["ln2_g"], p["ln2_b"]).reshape(1, S, EMBED_SIZE)


if __name__ == "__main__":
    key = jax.random.PRNGKey(0)
    kx, km, kp = jax.random.split(key, 3)

    SEQ = 64
    x = jax.random.normal(kx, (BATCH_SIZE, SEQ, EMBED_SIZE), jnp.float32)
    # padding-style mask, shape (1, 1, S, S), True == masked
    mask = jax.random.bernoulli(km, 0.2, (1, 1, SEQ, SEQ))

    params = init_params(kp)

    # block_rows=32 -> grid=(2,), exercises the parallel token-tile grid.
    out = enc_layer_forward(x, mask, params, block_rows=32)
    out = jax.block_until_ready(out)

    ref = reference_forward(x, mask, params)
    assert out.shape == (BATCH_SIZE, SEQ, EMBED_SIZE)
    max_err = float(jnp.max(jnp.abs(out - ref)))
    # bf16 matmul operands (f32 accumulation) -> relaxed tolerance vs f32 ref.
    assert jnp.allclose(out, ref, atol=5e-2, rtol=5e-2), \
        f"mismatch vs reference, max_abs_err={max_err}"

    print("KERNEL_OK")
</pallas_src>

<mosaic_0001>
module attributes {stable_mosaic.version = 11 : i64} {
  func.func @kv_proj_kernel(%arg0: i32, %arg1: memref<32x512xbf16, #tpu.memory_space<vmem>>, %arg2: memref<512x512xbf16, #tpu.memory_space<vmem>>, %arg3: memref<1x512xf32, #tpu.memory_space<vmem>>, %arg4: memref<512x512xbf16, #tpu.memory_space<vmem>>, %arg5: memref<1x512xf32, #tpu.memory_space<vmem>>, %arg6: memref<32x512xbf16, #tpu.memory_space<vmem>>, %arg7: memref<32x512xbf16, #tpu.memory_space<vmem>>) attributes {dimension_semantics = [#tpu.dimension_semantics<parallel>], iteration_bounds = array<i64: 2>, scalar_prefetch = 0 : i64, scratch_operands = 0 : i64, tpu.core_type = #tpu.core_type<tc>, window_params = [{transform_indices = @transform_0, window_bounds = array<i64: 32, 512>}, {pipeline_mode = #tpu.pipeline_mode<synchronous>, transform_indices = @transform_1, window_bounds = array<i64: 512, 512>}, {pipeline_mode = #tpu.pipeline_mode<synchronous>, transform_indices = @transform_2, window_bounds = array<i64: 1, 512>}, {pipeline_mode = #tpu.pipeline_mode<synchronous>, transform_indices = @transform_3, window_bounds = array<i64: 512, 512>}, {pipeline_mode = #tpu.pipeline_mode<synchronous>, transform_indices = @transform_4, window_bounds = array<i64: 1, 512>}, {transform_indices = @transform_5, window_bounds = array<i64: 32, 512>}, {transform_indices = @transform_6, window_bounds = array<i64: 32, 512>}]} {
    %c0 = arith.constant 0 : index
    %c0_0 = arith.constant 0 : index
    %0 = vector.load %arg1[%c0, %c0_0] : memref<32x512xbf16, #tpu.memory_space<vmem>>, vector<32x512xbf16>
    %c0_1 = arith.constant 0 : index
    %c0_2 = arith.constant 0 : index
    %1 = vector.load %arg2[%c0_1, %c0_2] : memref<512x512xbf16, #tpu.memory_space<vmem>>, vector<512x512xbf16>
    %cst = arith.constant dense<0.000000e+00> : vector<32x512xf32>
    %2 = tpu.matmul %0, %1, %cst {dimension_numbers = #tpu.dot_dimension_numbers<[1], [0], [0], [1], [0, 0, 1, 1], [], []>} : vector<32x512xbf16>, vector<512x512xbf16>, vector<32x512xf32> -> vector<32x512xf32>
    %c0_3 = arith.constant 0 : index
    %c0_4 = arith.constant 0 : index
    %3 = vector.load %arg3[%c0_3, %c0_4] : memref<1x512xf32, #tpu.memory_space<vmem>>, vector<1x512xf32>
    %4 = vector.broadcast %3 : vector<1x512xf32> to vector<32x512xf32>
    %5 = arith.addf %2, %4 : vector<32x512xf32>
    %6 = arith.truncf %5 : vector<32x512xf32> to vector<32x512xbf16>
    %c0_5 = arith.constant 0 : index
    %c0_6 = arith.constant 0 : index
    %7 = vector.load %arg6[%c0_5, %c0_6] : memref<32x512xbf16, #tpu.memory_space<vmem>>, vector<32x512xbf16>
    tpu.vector_store %arg6[%c0_5, %c0_6], %6 {strides = array<i32>} : memref<32x512xbf16, #tpu.memory_space<vmem>>, vector<32x512xbf16>,
    %c0_7 = arith.constant 0 : index
    %c0_8 = arith.constant 0 : index
    %8 = vector.load %arg4[%c0_7, %c0_8] : memref<512x512xbf16, #tpu.memory_space<vmem>>, vector<512x512xbf16>
    %cst_9 = arith.constant dense<0.000000e+00> : vector<32x512xf32>
    %9 = tpu.matmul %0, %8, %cst_9 {dimension_numbers = #tpu.dot_dimension_numbers<[1], [0], [0], [1], [0, 0, 1, 1], [], []>} : vector<32x512xbf16>, vector<512x512xbf16>, vector<32x512xf32> -> vector<32x512xf32>
    %c0_10 = arith.constant 0 : index
    %c0_11 = arith.constant 0 : index
    %10 = vector.load %arg5[%c0_10, %c0_11] : memref<1x512xf32, #tpu.memory_space<vmem>>, vector<1x512xf32>
    %11 = vector.broadcast %10 : vector<1x512xf32> to vector<32x512xf32>
    %12 = arith.addf %9, %11 : vector<32x512xf32>
    %13 = arith.truncf %12 : vector<32x512xf32> to vector<32x512xbf16>
    %c0_12 = arith.constant 0 : index
    %c0_13 = arith.constant 0 : index
    %14 = vector.load %arg7[%c0_12, %c0_13] : memref<32x512xbf16, #tpu.memory_space<vmem>>, vector<32x512xbf16>
    tpu.vector_store %arg7[%c0_12, %c0_13], %13 {strides = array<i32>} : memref<32x512xbf16, #tpu.memory_space<vmem>>, vector<32x512xbf16>,
    return
  }
  func.func @transform_0(%arg0: i32) -> (i32, i32) {
    %c0_i32 = arith.constant 0 : i32
    %c0_i32_0 = arith.constant 0 : i32
    return %arg0, %c0_i32 : i32, i32
  }
  func.func @transform_1(%arg0: i32) -> (i32, i32) {
    %c0_i32 = arith.constant 0 : i32
    %c0_i32_0 = arith.constant 0 : i32
    %c0_i32_1 = arith.constant 0 : i32
    return %c0_i32, %c0_i32_0 : i32, i32
  }
  func.func @transform_2(%arg0: i32) -> (i32, i32) {
    %c0_i32 = arith.constant 0 : i32
    %c0_i32_0 = arith.constant 0 : i32
    %c0_i32_1 = arith.constant 0 : i32
    return %c0_i32, %c0_i32_0 : i32, i32
  }
  func.func @transform_3(%arg0: i32) -> (i32, i32) {
    %c0_i32 = arith.constant 0 : i32
    %c0_i32_0 = arith.constant 0 : i32
    %c0_i32_1 = arith.constant 0 : i32
    return %c0_i32, %c0_i32_0 : i32, i32
  }
  func.func @transform_4(%arg0: i32) -> (i32, i32) {
    %c0_i32 = arith.constant 0 : i32
    %c0_i32_0 = arith.constant 0 : i32
    %c0_i32_1 = arith.constant 0 : i32
    return %c0_i32, %c0_i32_0 : i32, i32
  }
  func.func @transform_5(%arg0: i32) -> (i32, i32) {
    %c0_i32 = arith.constant 0 : i32
    %c0_i32_0 = arith.constant 0 : i32
    return %arg0, %c0_i32 : i32, i32
  }
  func.func @transform_6(%arg0: i32) -> (i32, i32) {
    %c0_i32 = arith.constant 0 : i32
    %c0_i32_0 = arith.constant 0 : i32
    return %arg0, %c0_i32 : i32, i32
  }
}

</mosaic_0001>

<bundles_post_ra>
// kernel: tpu_custom_call.1
= control target key start
LH: loop header
LB: loop body
LE: loop exit
PB: predicated region body
PF: predicated region fallthrough
CT: control target
= control target key end

     0   :  { %12 = vsyncpa [#allocation3], 0  ;;  %s4093_s0 = inlined_call_operand.hbm [shape: bf16[64,512], index: 0, kind: input, shape index: {}]   ;;  %s4094_s1 = inlined_call_operand.hbm [shape: bf16[512,512], index: 1, kind: input, shape index: {}]   ;;  %s4095_s2 = inlined_call_operand.hbm [shape: f32[1,512], index: 2, kind: input, shape index: {}]   ;;  %s4096_s3 = inlined_call_operand.hbm [shape: bf16[512,512], index: 3, kind: input, shape index: {}]   ;;  %s4097_s4 = inlined_call_operand.vmem [shape: f32[1,512], index: 4, kind: input, shape index: {}]   ;;  %s4098_s5 = inlined_call_operand.hbm [shape: bf16[64,512], index: 5, kind: output, shape index: {0}]   ;;  %s4099_s6 = inlined_call_operand.hbm [shape: bf16[64,512], index: 6, kind: output, shape index: {1}]  }
   0x1   :  { %14 = vsyncpa [#allocation3 + $0x1], 0 }
   0x2   :  { %15 = vsyncpa [#allocation6], 0 }
   0x3   :  { %16 = vsyncpa [#allocation9], 0 }
   0x4   :  { %17 = vsyncpa [#allocation4], 0 }
   0x5   :  { %19 = vsyncpa [#allocation4 + $0x1], 0 }
   0x6   :  { %20 = vsyncpa [#allocation12], 0 }
   0x7   :  { %22 = vsyncpa [#allocation12 + $0x1], 0  ;;  %s3736_s21 = smov 0   ;;  %s3738_s22 = smov 0  }
   0x8   :  { %s3740_s23 = smov 0   ;;  %s3742_s24 = smov 0  }
   0x9 LB: > { %s3757_s25 = sadd.s32 4294967295, %s3689_s24   ;;  %s2662_s26 = sadd.s32 4294967294, %s3689_s24   ;;  %s3689_s24 = sphi %s3742_s24, %s4127_s24   ;;  %s3685_s23 = sphi %s3740_s23, %s4126_s23   ;;  %s3681_s22 = sphi %s3738_s22, %s4125_s22   ;;  %s3677_s21 = sphi %s3736_s21, %s4124_s21  }
   0xa   : > { %p48_p0 = scmp.ne.s32.totalorder %s3681_s22, %s3677_s21  ;;  %p4100_p1 = scmp.eq.s32.totalorder %s3757_s25, 0 }
   0xb   : > { %p162_p3 = scmp.eq.s32.totalorder %s2662_s26, 1  ;;  %p2663_p5 = scmp.ge.s32.totalorder %s3689_s24, 1 }
   0xc   : > { %p3766_p4 = por %p4100_p1, %p48_p0  ;;  %p195_p7 = scmp.lt.s32.totalorder %s3689_s24, 3 }
   0xd   : > { %p3771_p6 = por %p162_p3, %p48_p0  ;;  %s3691_s30 = smov [#allocation5]  }
   0xe   : > { %s4106_s27 = scalar_select %p3766_p4, 1, 0 }
   0xf   : > { %s4107_s28 = scalar_select %p3771_p6, 1, 0 }
  0x10   : > { %p3776_p8 = pnand %p2663_p5, %p195_p7  ;;  %s207_s7 = sshll.u32 %s3691_s30, 4  ;;  %s208_s7 = int_to_ptr.vmem [resolvable:$true] %s207_s7 }
  0x11   : > { %s3692_s9 = smov [#allocation7]   ;;  %s3693_s11 = smov [#allocation8]  }
  0x12   : > { %s4108_s29 = scalar_select %p3776_p8, 1, 0 }
  0x13   : > { %p3009_p9 = pneg %p3776_p8  ;;  %s221_s10 = sshll.u32 %s3692_s9, 4  ;;  %s222_s10 = int_to_ptr.vmem [resolvable:$true] %s221_s10 }
  0x14   : > { %s231_s12 = sshll.u32 %s3693_s11, 4  ;;  %s3492_s13 = scalar_lea.vmem %s208_s7, 16384  ;;  %s232_s12 = int_to_ptr.vmem [resolvable:$true] %s231_s12 }
  0x15   : > { %p3785_p11 = pnand %p3009_p9, %p4100_p1  ;;  %p3493_p13 = scmp.ne.s32.totalorder %s208_s7, %s3492_s13 }
  0x16   : > { %p3500_p5 = scmp.lt.s32.totalorder %s208_s7, %s208_s7  ;;  %p3501_p7 = scmp.lt.s32.totalorder %s3492_s13, %s3492_s13 }
  0x17   : > { %p3483_p12 = pneg %p3785_p11 }
  0x18   : > { %p3502_p9 = por %p3501_p7, %p3500_p5 }
  0x19   : > { %p3495_p0 = pnand %p3493_p13, %p3483_p12 }
  0x1b   : > { %p3496_p3 = pneg %p3495_p0 }
  0x1d   : > { %p3503_p10 = pnand %p3502_p9, %p3496_p3 }
  0x1f   : > { %3506 = shalt.err (!%p3503_p10)
}
  0x20   : > { %s4102_s14 = smov 256   ;;  %s4103_s15 = smov 16  }
  0x21   : > { %3012 = dma.hbm_to_vmem [thread:$0]  (!%p3785_p11), %s4094_s1, 16384, %s208_s7, [#allocation6], %s4102_s14, %s4102_s14, %s4103_s15  }
  0x22   : > { %s3518_s18 = scalar_lea.vmem %s222_s10, 64  ;;  %p3526_p3 = scmp.lt.s32.totalorder %s222_s10, %s222_s10 }
  0x23   : > { %p3519_p13 = scmp.ne.s32.totalorder %s222_s10, %s3518_s18  ;;  %p3527_p10 = scmp.lt.s32.totalorder %s3518_s18, %s3518_s18 }
  0x25   : > { %p3521_p0 = pnand %p3519_p13, %p3483_p12  ;;  %p3528_p7 = por %p3527_p10, %p3526_p3 }
  0x27   : > { %p3522_p5 = pneg %p3521_p0 }
  0x29   : > { %p3529_p9 = pnand %p3528_p7, %p3522_p5 }
  0x2b   : > { %3532 = shalt.err (!%p3529_p9)
}
  0x2c   : > { %3015 = dma.hbm_to_vmem [thread:$0]  (!%p3785_p11), %s4095_s2, 64, %s222_s10, [#allocation6]  }
  0x2d   : > { %s3544_s26 = scalar_lea.vmem %s232_s12, 16384  ;;  %p3552_p0 = scmp.lt.s32.totalorder %s232_s12, %s232_s12 }
  0x2e   : > { %p3545_p1 = scmp.ne.s32.totalorder %s232_s12, %s3544_s26  ;;  %p3553_p6 = scmp.lt.s32.totalorder %s3544_s26, %s3544_s26 }
  0x30   : > { %p3547_p2 = pnand %p3545_p1, %p3483_p12  ;;  %p3554_p4 = por %p3553_p6, %p3552_p0 }
  0x32   : > { %p3548_p13 = pneg %p3547_p2 }
  0x34   : > { %p3555_p3 = pnand %p3554_p4, %p3548_p13 }
  0x36   : > { %3558 = shalt.err (!%p3555_p3)
}
  0x37   : > { %3018 = dma.hbm_to_vmem [thread:$0]  (!%p3785_p11), %s4096_s3, 16384, %s232_s12, [#allocation9], %s4102_s14, %s4102_s14, %s4103_s15  }
  0x38   : > { %s3822_s9 = sadd.s32 1, %s3689_s24   ;;  %s35_s10 = sadd.s32 1, %s3685_s23 }
  0x39   : > { %s32_s8 = ssub.s32 %s3689_s24, %s3822_s9  ;;  %p42_p2 = scmp.ne.s32.totalorder %s3685_s23, %s3681_s22 }
  0x3a   : > { %p33_p1 = scmp.eq.s32.totalorder %s32_s8, 0  ;;  %p43_p4 = scmp.eq.s32.totalorder %s3689_s24, 0 }
  0x3b   : > { %p3033_p6 = scmp.lt.s32.totalorder %s3689_s24, 2  ;;  %p4110_p5 = scmp.eq.s32.totalorder %s3757_s25, 1 }
  0x3c   : > { %s3832_s11 = scalar_select %p33_p1, %s3685_s23, %s35_s10  }
  0x3d   : > { %p44_p12 = por %p43_p4, %p42_p2  ;;  %p3836_p10 = por %p4110_p5, %p42_p2 }
  0x3e   : > { %s248_s16 = sand.u32 1, %s3685_s23   ;;  %s2970_s17 = sshll.u32 %s3689_s24, 10 }
  0x3f   : > { %s4111_s13 = scalar_select %p3836_p10, 1, 0 }
  0x40   : > { %s2668_s12 = sshll.u32 %s248_s16, 6  ;;  %s3845_s20 = scalar_lea.hbm %s4093_s0, %s2970_s17 }
  0x41   : > { %s252_s26 = scalar_lea.vmem [#allocation2], %s2668_s12  ;;  %p3847_p11 = pnand %p3033_p6, %p44_p12 }
  0x42   : > { %s260_s30 = sshll.u32 %s252_s26, 4  ;;  %s3853_s8 = scalar_lea.sflag [#allocation3], %s248_s16  ;;  %s3851_s30 = int_to_ptr.vmem [resolvable:$true] %s260_s30 }
  0x43   : > { %s3559_s10 = scalar_lea.hbm %s3845_s20, 1024  ;;  %p3561_p9 = pneg %p3847_p11 }
  0x44   : > { %p3560_p7 = scmp.ne.s32.totalorder %s3845_s20, %s3559_s10  ;;  %s3564_s12 = scalar_lea.hbm %s4093_s0, 2048 }
  0x45   : > { %p3565_p3 = scmp.lt.s32.totalorder %s3845_s20, %s4093_s0  ;;  %p3566_p1 = scmp.lt.s32.totalorder %s3564_s12, %s3559_s10 }
  0x46   : > { %p3562_p13 = pnand %p3561_p9, %p3560_p7 }
  0x47   : > { %p3567_p2 = por %p3566_p1, %p3565_p3 }
  0x48   : > { %p3563_p0 = pneg %p3562_p13 }
  0x4a   : > { %p3568_p4 = pnand %p3567_p2, %p3563_p0 }
  0x4c   : > { %3571 = shalt.err (!%p3568_p4)
}
  0x4d   : > { %s3572_s16 = scalar_lea.vmem %s3851_s30, 1024  ;;  %s3696_s14 = smov [#allocation2]  }
  0x4e   : > { %p3573_p6 = scmp.ne.s32.totalorder %s3851_s30, %s3572_s16  ;;  %s3577_s15 = sshll.u32 %s3696_s14, 4  ;;  %s3578_s15 = int_to_ptr.vmem [resolvable:$false] %s3577_s15 }
  0x4f   : > { %s3579_s17 = scalar_lea.vmem %s3578_s15, 2048  ;;  %p3580_p7 = scmp.lt.s32.totalorder %s3851_s30, %s3578_s15 }
  0x50   : > { %p3575_p12 = pnand %p3573_p6, %p3561_p9  ;;  %p3581_p13 = scmp.lt.s32.totalorder %s3579_s17, %s3572_s16 }
  0x52   : > { %p3576_p5 = pneg %p3575_p12  ;;  %p3582_p10 = por %p3581_p13, %p3580_p7 }
  0x54   : > { %p3583_p8 = pnand %p3582_p10, %p3576_p5 }
  0x56   : > { %3586 = shalt.err (!%p3583_p8)
}
  0x57   : > { %s4113_s10 = smov 16   ;;  %s4114_s18 = smov 256  }
  0x58   : > { %3022 = dma.hbm_to_vmem [thread:$0]  (!%p3847_p11), %s3845_s20, 1024, %s3851_s30, %s3853_s8, %s4114_s18, %s4114_s18, %s4113_s10  }
  0x59   : > { %p4115_p9 = scmp.ne.s32.totalorder %s4108_s29, 0 }
  0x5a   : > { %s3880_s14 = sand.u32 (!%p4115_p9), 1, %s3681_s22   ;;  %p4116_p8 = scmp.ne.s32.totalorder (!%p4115_p9), %s4106_s27, 0 }
  0x5b   : > { %272 = sbr.rel (%p4115_p9) target bundleno = 586 (0x24a), region = 40  ;;  %s3883_s15 = sshll.u32 (!%p4115_p9), %s3880_s14, 6 }
  0x5c   : > { %s275_s7 = scalar_lea.sflag (!%p4115_p9), [#allocation3], %s3880_s14  ;;  %s3887_s12 = scalar_lea.vmem (!%p4115_p9), [#allocation2], %s3883_s15 }
  0x60   : > { %3656 = dma.done.wait (%p4116_p8), %s275_s7, 1024  }
  0x61   : > { %3658 = vsyncadd (%p4116_p8), %s275_s7, 4294966272  ;;  %p4117_p10 = scmp.eq.s32.totalorder %s3757_s25, 0 }
  0x63   : > { %3660 = dma.done.wait (%p4117_p10), [#allocation6], 16448   ;;  %p4118_p11 = pmov %p4117_p10 }
  0x64   : > { %p4119_p0 = pmov %p4117_p10 }
  0x65   : > { %3662 = vsyncadd (%p4118_p11), [#allocation6], 4294950848 }
  0x66   : > { %3664 = dma.done.wait (%p4119_p0), [#allocation9], 16384   ;;  %p4120_p3 = pmov %p4119_p0 }
  0x67   : > { %v3077_v0 = vld [vmem:[#allocation5 + $0xe4] ss:$16 sps:$4 sm:$0xff]   ;;  %v3081_v2 = vld [vmem:[#allocation5 + $0xe0] ss:$16 sps:$4 sm:$0xff]   ;;  %v3905_v50 = vld [vmem:[%s3887_s12 + $0xc] ss:$16 sps:$4 sm:$0xff]  }
  0x68   : > { %3666 = vsyncadd (%p4120_p3), [#allocation9], 4294950912  ;;  %v3079_v1 = vld [vmem:[#allocation5 + $0x2e4] ss:$16 sps:$4 sm:$0xff]   ;;  %1165 = vmatprep.subr.bf16.mxu0 %v3077_v0  ;;  %v3082_v3 = vld [vmem:[#allocation5 + $0x2e0] ss:$16 sps:$4 sm:$0xff]   ;;  %1250 = vmatprep.mubr.bf16.mxu1 %v3905_v50 }
  0x69   : > { %1218 = vmatprep.subr.bf16.mxu1 %v3079_v1  ;;  %v3083_v4 = vld [vmem:[#allocation5 + $0xc4] ss:$16 sps:$4 sm:$0xff]   ;;  %1166 = vmatpush1.bf16.msra.mxu0 %v3081_v2  ;;  %v3087_v6 = vld [vmem:[#allocation5 + $0xc0] ss:$16 sps:$4 sm:$0xff]   ;;  %v3181_v2 = vld [vmem:[#allocation5 + $0xec] ss:$16 sps:$4 sm:$0xff]  }
  0x6a   : > { %1219 = vmatpush1.bf16.msra.mxu1 %v3082_v3  ;;  %v3085_v5 = vld [vmem:[#allocation5 + $0x2c4] ss:$16 sps:$4 sm:$0xff]   ;;  %1167 = vmatprep.subr.bf16.mxu0 %v3083_v4  ;;  %v3088_v7 = vld [vmem:[#allocation5 + $0x2c0] ss:$16 sps:$4 sm:$0xff]   ;;  %v3184_v3 = vld [vmem:[#allocation5 + $0x2ec] ss:$16 sps:$4 sm:$0xff]  }
  0x6b   : > { %1220 = vmatprep.subr.bf16.mxu1 %v3085_v5  ;;  %v3089_v8 = vld [vmem:[#allocation5 + $0xa4] ss:$16 sps:$4 sm:$0xff]   ;;  %v3093_v10 = vld [vmem:[#allocation5 + $0xa0] ss:$16 sps:$4 sm:$0xff]   ;;  %v3913_v5 = vld [vmem:[%s3887_s12 + $0x8] ss:$16 sps:$4 sm:$0xff]  }
  0x6c   : > { %v3091_v9 = vld [vmem:[#allocation5 + $0x2a4] ss:$16 sps:$4 sm:$0xff]   ;;  %v3094_v11 = vld [vmem:[#allocation5 + $0x2a0] ss:$16 sps:$4 sm:$0xff]   ;;  %s3966_s27 = scalar_lea.vmem [#allocation10], %s3883_s15  ;;  %s2988_s20 = sshll.u32 %s3757_s25, 10 }
  0x6d   : > { %1168 = vmatpush1.bf16.msra.mxu0 %v3087_v6  ;;  %v3095_v12 = vld [vmem:[#allocation5 + $0x84] ss:$16 sps:$4 sm:$0xff]   ;;  %v3099_v14 = vld [vmem:[#allocation5 + $0x80] ss:$16 sps:$4 sm:$0xff]   ;;  %v3179_v6 = vld [vmem:[#allocation5 + $0xe8] ss:$16 sps:$4 sm:$0xff]   ;;  %s3991_s19 = scalar_lea.hbm %s4098_s5, %s2988_s20 }
  0x6e   : > { %1221 = vmatpush1.bf16.msra.mxu1 %v3088_v7  ;;  %1169 = vmatprep.subr.bf16.mxu0 %v3089_v8  ;;  %v3097_v13 = vld [vmem:[#allocation5 + $0x284] ss:$16 sps:$4 sm:$0xff]   ;;  %v3100_v15 = vld [vmem:[#allocation5 + $0x280] ss:$16 sps:$4 sm:$0xff]   ;;  %v3182_v7 = vld [vmem:[#allocation5 + $0x2e8] ss:$16 sps:$4 sm:$0xff]  }
  0x6f   : > { %1222 = vmatprep.subr.bf16.mxu1 %v3091_v9  ;;  %v3101_v16 = vld [vmem:[#allocation5 + $0x64] ss:$16 sps:$4 sm:$0xff]   ;;  %v3105_v18 = vld [vmem:[#allocation5 + $0x60] ss:$16 sps:$4 sm:$0xff]   ;;  %v3187_v8 = vld [vmem:[#allocation5 + $0xcc] ss:$16 sps:$4 sm:$0xff]  }
  0x70   : > { %v3103_v17 = vld [vmem:[#allocation5 + $0x264] ss:$16 sps:$4 sm:$0xff]   ;;  %v3106_v19 = vld [vmem:[#allocation5 + $0x260] ss:$16 sps:$4 sm:$0xff]   ;;  %v3190_v9 = vld [vmem:[#allocation5 + $0x2cc] ss:$16 sps:$4 sm:$0xff]  }
  0x71   : > { %1170 = vmatpush1.bf16.msra.mxu0 %v3093_v10  ;;  %v3107_v20 = vld [vmem:[#allocation5 + $0x44] ss:$16 sps:$4 sm:$0xff]   ;;  %v3111_v22 = vld [vmem:[#allocation5 + $0x40] ss:$16 sps:$4 sm:$0xff]   ;;  %v3185_v10 = vld [vmem:[#allocation5 + $0xc8] ss:$16 sps:$4 sm:$0xff]  }
  0x72   : > { %1223 = vmatpush1.bf16.msra.mxu1 %v3094_v11  ;;  %1171 = vmatprep.subr.bf16.mxu0 %v3095_v12  ;;  %v3109_v21 = vld [vmem:[#allocation5 + $0x244] ss:$16 sps:$4 sm:$0xff]   ;;  %v3112_v23 = vld [vmem:[#allocation5 + $0x240] ss:$16 sps:$4 sm:$0xff]   ;;  %v3188_v11 = vld [vmem:[#allocation5 + $0x2c8] ss:$16 sps:$4 sm:$0xff]  }
  0x73   : > { %1224 = vmatprep.subr.bf16.mxu1 %v3097_v13  ;;  %v3113_v24 = vld [vmem:[#allocation5 + $0x24] ss:$16 sps:$4 sm:$0xff]   ;;  %v3117_v26 = vld [vmem:[#allocation5 + $0x20] ss:$16 sps:$4 sm:$0xff]   ;;  %v3193_v12 = vld [vmem:[#allocation5 + $0xac] ss:$16 sps:$4 sm:$0xff]  }
  0x74   : > { %v3115_v25 = vld [vmem:[#allocation5 + $0x224] ss:$16 sps:$4 sm:$0xff]   ;;  %v3118_v27 = vld [vmem:[#allocation5 + $0x220] ss:$16 sps:$4 sm:$0xff]   ;;  %v3196_v13 = vld [vmem:[#allocation5 + $0x2ac] ss:$16 sps:$4 sm:$0xff]  }
  0x75   : > { %1172 = vmatpush1.bf16.msra.mxu0 %v3099_v14  ;;  %v3119_v28 = vld [vmem:[#allocation5 + $0x4] ss:$16 sps:$4 sm:$0xff]   ;;  %v3123_v30 = vld [vmem:[#allocation5] ss:$16 sps:$4 sm:$0xff]   ;;  %v3191_v14 = vld [vmem:[#allocation5 + $0xa8] ss:$16 sps:$4 sm:$0xff]  }
  0x76   : > { %1225 = vmatpush1.bf16.msra.mxu1 %v3100_v15  ;;  %1173 = vmatprep.subr.bf16.mxu0 %v3101_v16  ;;  %v3121_v29 = vld [vmem:[#allocation5 + $0x204] ss:$16 sps:$4 sm:$0xff]   ;;  %v3124_v31 = vld [vmem:[#allocation5 + $0x200] ss:$16 sps:$4 sm:$0xff]   ;;  %v3194_v15 = vld [vmem:[#allocation5 + $0x2a8] ss:$16 sps:$4 sm:$0xff]  }
  0x77   : > { %1226 = vmatprep.subr.bf16.mxu1 %v3103_v17  ;;  %v3125_v32 = vld [vmem:[#allocation5 + $0x1e4] ss:$16 sps:$4 sm:$0xff]   ;;  %v3129_v34 = vld [vmem:[#allocation5 + $0x1e0] ss:$16 sps:$4 sm:$0xff]   ;;  %v3199_v16 = vld [vmem:[#allocation5 + $0x8c] ss:$16 sps:$4 sm:$0xff]  }
  0x78   : > { %v3127_v33 = vld [vmem:[#allocation5 + $0x3e4] ss:$16 sps:$4 sm:$0xff]   ;;  %v3130_v35 = vld [vmem:[#allocation5 + $0x3e0] ss:$16 sps:$4 sm:$0xff]   ;;  %v3202_v17 = vld [vmem:[#allocation5 + $0x28c] ss:$16 sps:$4 sm:$0xff]  }
  0x79   : > { %1174 = vmatpush1.bf16.msra.mxu0 %v3105_v18  ;;  %v3131_v36 = vld [vmem:[#allocation5 + $0x1c4] ss:$16 sps:$4 sm:$0xff]   ;;  %v3135_v38 = vld [vmem:[#allocation5 + $0x1c0] ss:$16 sps:$4 sm:$0xff]   ;;  %v3197_v18 = vld [vmem:[#allocation5 + $0x88] ss:$16 sps:$4 sm:$0xff]  }
  0x7a   : > { %1227 = vmatpush1.bf16.msra.mxu1 %v3106_v19  ;;  %1175 = vmatprep.subr.bf16.mxu0 %v3107_v20  ;;  %v3133_v37 = vld [vmem:[#allocation5 + $0x3c4] ss:$16 sps:$4 sm:$0xff]   ;;  %v3136_v39 = vld [vmem:[#allocation5 + $0x3c0] ss:$16 sps:$4 sm:$0xff]   ;;  %v3200_v19 = vld [vmem:[#allocation5 + $0x288] ss:$16 sps:$4 sm:$0xff]  }
  0x7b   : > { %1228 = vmatprep.subr.bf16.mxu1 %v3109_v21  ;;  %v3137_v40 = vld [vmem:[#allocation5 + $0x1a4] ss:$16 sps:$4 sm:$0xff]   ;;  %v3141_v42 = vld [vmem:[#allocation5 + $0x1a0] ss:$16 sps:$4 sm:$0xff]   ;;  %v3205_v20 = vld [vmem:[#allocation5 + $0x6c] ss:$16 sps:$4 sm:$0xff]  }
  0x7c   : > { %v3139_v41 = vld [vmem:[#allocation5 + $0x3a4] ss:$16 sps:$4 sm:$0xff]   ;;  %v3142_v43 = vld [vmem:[#allocation5 + $0x3a0] ss:$16 sps:$4 sm:$0xff]   ;;  %v3208_v21 = vld [vmem:[#allocation5 + $0x26c] ss:$16 sps:$4 sm:$0xff]  }
  0x7d   : > { %1176 = vmatpush1.bf16.msra.mxu0 %v3111_v22  ;;  %v3143_v44 = vld [vmem:[#allocation5 + $0x184] ss:$16 sps:$4 sm:$0xff]   ;;  %v3147_v46 = vld [vmem:[#allocation5 + $0x180] ss:$16 sps:$4 sm:$0xff]   ;;  %v3203_v22 = vld [vmem:[#allocation5 + $0x68] ss:$16 sps:$4 sm:$0xff]  }
  0x7e   : > { %1229 = vmatpush1.bf16.msra.mxu1 %v3112_v23  ;;  %1177 = vmatprep.subr.bf16.mxu0 %v3113_v24  ;;  %v3145_v45 = vld [vmem:[#allocation5 + $0x384] ss:$16 sps:$4 sm:$0xff]   ;;  %v3148_v47 = vld [vmem:[#allocation5 + $0x380] ss:$16 sps:$4 sm:$0xff]   ;;  %v3206_v23 = vld [vmem:[#allocation5 + $0x268] ss:$16 sps:$4 sm:$0xff]  }
  0x7f   : > { %1230 = vmatprep.subr.bf16.mxu1 %v3115_v25  ;;  %v3902_v48 = vld [vmem:[%s3887_s12 + $0x4] ss:$16 sps:$4 sm:$0xff]   ;;  %v3153_v52 = vld [vmem:[#allocation5 + $0x160] ss:$16 sps:$4 sm:$0xff]   ;;  %v3211_v24 = vld [vmem:[#allocation5 + $0x4c] ss:$16 sps:$4 sm:$0xff]  }
  0x80   : > { %v3149_v49 = vld [vmem:[#allocation5 + $0x164] ss:$16 sps:$4 sm:$0xff]   ;;  %1197 = vmatprep.mubr.bf16.mxu0 %v3902_v48  ;;  %v3154_v53 = vld [vmem:[#allocation5 + $0x360] ss:$16 sps:$4 sm:$0xff]   ;;  %v3214_v25 = vld [vmem:[#allocation5 + $0x24c] ss:$16 sps:$4 sm:$0xff]  }
  0x81   : > { %1178 = vmatpush1.bf16.msra.mxu0 %v3117_v26  ;;  %v3151_v51 = vld [vmem:[#allocation5 + $0x364] ss:$16 sps:$4 sm:$0xff]   ;;  %v3159_v56 = vld [vmem:[#allocation5 + $0x140] ss:$16 sps:$4 sm:$0xff]   ;;  %s2511_s29 = sshll.u32 %s3966_s27, 4  ;;  %s2492_s26 = scalar_lea.sflag [#allocation4], %s3880_s14  ;;  %s3982_s29 = int_to_ptr.vmem [resolvable:$true] %s2511_s29 }
  0x82   : > { %1231 = vmatpush1.bf16.msra.mxu1 %v3118_v27  ;;  %1179 = vmatprep.subr.bf16.mxu0 %v3119_v28  ;;  %v3155_v54 = vld [vmem:[#allocation5 + $0x144] ss:$16 sps:$4 sm:$0xff]   ;;  %v3160_v57 = vld [vmem:[#allocation5 + $0x340] ss:$16 sps:$4 sm:$0xff]   ;;  %v3925_v28 = vld [vmem:[%s3887_s12 + $0x2c] ss:$16 sps:$4 sm:$0xff]  }
  0x83   : > { %1232 = vmatprep.subr.bf16.mxu1 %v3121_v29  ;;  %v3157_v55 = vld [vmem:[#allocation5 + $0x344] ss:$16 sps:$4 sm:$0xff]   ;;  %v3165_v60 = vld [vmem:[#allocation5 + $0x120] ss:$16 sps:$4 sm:$0xff]   ;;  %v3209_v29 = vld [vmem:[#allocation5 + $0x48] ss:$16 sps:$4 sm:$0xff]  }
  0x84   : > { %v3161_v58 = vld [vmem:[#allocation5 + $0x124] ss:$16 sps:$4 sm:$0xff]   ;;  %v3166_v61 = vld [vmem:[#allocation5 + $0x320] ss:$16 sps:$4 sm:$0xff]   ;;  %s3587_s16 = scalar_lea.vmem %s3982_s29, 1024  ;;  %p4121_p2 = scmp.ne.s32.totalorder %s4111_s13, 0 }
  0x85   : > { %1180 = vmatpush1.bf16.msra.mxu0 %v3123_v30  ;;  %v3163_v59 = vld [vmem:[#allocation5 + $0x324] ss:$16 sps:$4 sm:$0xff]   ;;  %v3171_v0 = vld [vmem:[#allocation5 + $0x100] ss:$16 sps:$4 sm:$0xff]   ;;  %v3212_v30 = vld [vmem:[#allocation5 + $0x248] ss:$16 sps:$4 sm:$0xff]   ;;  %p3588_p1 = scmp.ne.s32.totalorder %s3982_s29, %s3587_s16 }
  0x86   : > { %1233 = vmatpush1.bf16.msra.mxu1 %v3124_v31  ;;  %1181 = vmatprep.subr.bf16.mxu0 %v3125_v32  ;;  %v3167_v62 = vld [vmem:[#allocation5 + $0x104] ss:$16 sps:$4 sm:$0xff]   ;;  %v3172_v1 = vld [vmem:[#allocation5 + $0x300] ss:$16 sps:$4 sm:$0xff]   ;;  %v3217_v31 = vld [vmem:[#allocation5 + $0x2c] ss:$16 sps:$4 sm:$0xff]  }
  0x87   : > { %1234 = vmatprep.subr.bf16.mxu1 %v3127_v33  ;;  %v3169_v63 = vld [vmem:[#allocation5 + $0x304] ss:$16 sps:$4 sm:$0xff]   ;;  %v3910_v4 = vld [vmem:[%s3887_s12] ss:$16 sps:$4 sm:$0xff]   ;;  %v3220_v32 = vld [vmem:[#allocation5 + $0x22c] ss:$16 sps:$4 sm:$0xff]   ;;  %p3589_p4 = pnand %p3588_p1, %p4121_p2 }
  0x88   : > { %v3918_v26 = vld [vmem:[%s3887_s12 + $0x24] ss:$16 sps:$4 sm:$0xff]   ;;  %v3921_v27 = vld [vmem:[%s3887_s12 + $0x20] ss:$16 sps:$4 sm:$0xff]   ;;  %v3929_v33 = vld [vmem:[%s3887_s12 + $0x28] ss:$16 sps:$4 sm:$0xff]  }
  0x89   : > { %1182 = vmatpush2.bf16.msra.mxu0 %v3129_v34  ;;  %v3215_v34 = vld [vmem:[#allocation5 + $0x28] ss:$16 sps:$4 sm:$0xff]   ;;  %p3590_p6 = pneg %p3589_p4  ;;  %s3697_s17 = smov [#allocation10]  }
  0x8a   : > { %1235 = vmatpush2.bf16.msra.mxu1 %v3130_v35  ;;  %1183 = vmatprep.subr.bf16.mxu0 %v3131_v36  ;;  %v3218_v35 = vld [vmem:[#allocation5 + $0x228] ss:$16 sps:$4 sm:$0xff]   ;;  %v3223_v36 = vld [vmem:[#allocation5 + $0xc] ss:$16 sps:$4 sm:$0xff]   ;;  %s3591_s10 = sshll.u32 %s3697_s17, 4  ;;  %s3592_s10 = int_to_ptr.vmem [resolvable:$false] %s3591_s10 }
  0x8b   : > { %1236 = vmatprep.subr.bf16.mxu1 %v3133_v37  ;;  %v3226_v37 = vld [vmem:[#allocation5 + $0x20c] ss:$16 sps:$4 sm:$0xff]   ;;  %s3593_s18 = scalar_lea.vmem %s3592_s10, 2048  ;;  %p3594_p12 = scmp.lt.s32.totalorder %s3982_s29, %s3592_s10 }
  0x8c   : > { %p3595_p5 = scmp.lt.s32.totalorder %s3593_s18, %s3587_s16 }
  0x8d   : > { %1184 = vmatpush2.bf16.msra.mxu0 %v3135_v38  ;;  %v3221_v38 = vld [vmem:[#allocation5 + $0x8] ss:$16 sps:$4 sm:$0xff]  }
  0x8e   : > { %1237 = vmatpush2.bf16.msra.mxu1 %v3136_v39  ;;  %1185 = vmatprep.subr.bf16.mxu0 %v3137_v40  ;;  %v3224_v39 = vld [vmem:[#allocation5 + $0x208] ss:$16 sps:$4 sm:$0xff]   ;;  %v3229_v40 = vld [vmem:[#allocation5 + $0x1ec] ss:$16 sps:$4 sm:$0xff]   ;;  %p3596_p7 = por %p3595_p5, %p3594_p12 }
  0x8f   : > { %1238 = vmatprep.subr.bf16.mxu1 %v3139_v41  ;;  %v3232_v41 = vld [vmem:[#allocation5 + $0x3ec] ss:$16 sps:$4 sm:$0xff]  }
  0x90   : > { %p3597_p13 = pnand %p3596_p7, %p3590_p6 }
  0x91   : > { %1186 = vmatpush2.bf16.msra.mxu0 %v3141_v42  ;;  %v3227_v42 = vld [vmem:[#allocation5 + $0x1e8] ss:$16 sps:$4 sm:$0xff]  }
  0x92   : > { %1239 = vmatpush2.bf16.msra.mxu1 %v3142_v43  ;;  %1187 = vmatprep.subr.bf16.mxu0 %v3143_v44  ;;  %v3230_v43 = vld [vmem:[#allocation5 + $0x3e8] ss:$16 sps:$4 sm:$0xff]   ;;  %v3235_v44 = vld [vmem:[#allocation5 + $0x1cc] ss:$16 sps:$4 sm:$0xff]  }
  0x93   : > { %1240 = vmatprep.subr.bf16.mxu1 %v3145_v45  ;;  %v3238_v45 = vld [vmem:[#allocation5 + $0x3cc] ss:$16 sps:$4 sm:$0xff]  }
  0x95   : > { %1188 = vmatpush2.bf16.msra.mxu0 %v3147_v46  ;;  %v3233_v46 = vld [vmem:[#allocation5 + $0x1c8] ss:$16 sps:$4 sm:$0xff]  }
  0x96   : > { %1241 = vmatpush2.bf16.msra.mxu1 %v3148_v47  ;;  %1189 = vmatprep.subr.bf16.mxu0 %v3149_v49  ;;  %v3236_v47 = vld [vmem:[#allocation5 + $0x3c8] ss:$16 sps:$4 sm:$0xff]   ;;  %v3241_v49 = vld [vmem:[#allocation5 + $0x1ac] ss:$16 sps:$4 sm:$0xff]  }
  0x97   : > { %1242 = vmatprep.subr.bf16.mxu1 %v3151_v51  ;;  %v3244_v51 = vld [vmem:[#allocation5 + $0x3ac] ss:$16 sps:$4 sm:$0xff]  }
  0x99   : > { %1190 = vmatpush2.bf16.msra.mxu0 %v3153_v52  ;;  %v3239_v52 = vld [vmem:[#allocation5 + $0x1a8] ss:$16 sps:$4 sm:$0xff]  }
  0x9a   : > { %1243 = vmatpush2.bf16.msra.mxu1 %v3154_v53  ;;  %1191 = vmatprep.subr.bf16.mxu0 %v3155_v54  ;;  %v3242_v53 = vld [vmem:[#allocation5 + $0x3a8] ss:$16 sps:$4 sm:$0xff]   ;;  %v3247_v54 = vld [vmem:[#allocation5 + $0x18c] ss:$16 sps:$4 sm:$0xff]  }
  0x9b   : > { %1244 = vmatprep.subr.bf16.mxu1 %v3157_v55  ;;  %v3250_v55 = vld [vmem:[#allocation5 + $0x38c] ss:$16 sps:$4 sm:$0xff]  }
  0x9d   : > { %1192 = vmatpush2.bf16.msra.mxu0 %v3159_v56  ;;  %v3245_v56 = vld [vmem:[#allocation5 + $0x188] ss:$16 sps:$4 sm:$0xff]  }
  0x9e   : > { %1245 = vmatpush2.bf16.msra.mxu1 %v3160_v57  ;;  %1193 = vmatprep.subr.bf16.mxu0 %v3161_v58  ;;  %v3248_v57 = vld [vmem:[#allocation5 + $0x388] ss:$16 sps:$4 sm:$0xff]   ;;  %v3253_v58 = vld [vmem:[#allocation5 + $0x16c] ss:$16 sps:$4 sm:$0xff]  }
  0x9f   : > { %1246 = vmatprep.subr.bf16.mxu1 %v3163_v59  ;;  %v3256_v59 = vld [vmem:[#allocation5 + $0x36c] ss:$16 sps:$4 sm:$0xff]  }
  0xa1   : > { %1194 = vmatpush2.bf16.msra.mxu0 %v3165_v60  ;;  %v3251_v60 = vld [vmem:[#allocation5 + $0x168] ss:$16 sps:$4 sm:$0xff]  }
  0xa2   : > { %1247 = vmatpush2.bf16.msra.mxu1 %v3166_v61  ;;  %1195 = vmatprep.subr.bf16.mxu0 %v3167_v62  ;;  %v3254_v61 = vld [vmem:[#allocation5 + $0x368] ss:$16 sps:$4 sm:$0xff]   ;;  %v3264_v62 = vld [vmem:[#allocation5 + $0x14c] ss:$16 sps:$4 sm:$0xff]  }
  0xa3   : > { %1248 = vmatprep.subr.bf16.mxu1 %v3169_v63  ;;  %v3267_v63 = vld [vmem:[#allocation5 + $0x34c] ss:$16 sps:$4 sm:$0xff]  }
  0xa5   : > { %1196 = vmatpush2.bf16.msra.mxu0 %v3171_v0  ;;  %v3262_v0 = vld [vmem:[#allocation5 + $0x148] ss:$16 sps:$4 sm:$0xff]  }
  0xa6   : > { %1249 = vmatpush2.bf16.msra.mxu1 %v3172_v1  ;;  %1271 = vmatprep.subr.bf16.mxu0 %v3181_v2  ;;  %v3265_v1 = vld [vmem:[#allocation5 + $0x348] ss:$16 sps:$4 sm:$0xff]   ;;  %v3271_v2 = vld [vmem:[#allocation5 + $0x12c] ss:$16 sps:$4 sm:$0xff]  }
  0xa7   : > { %1324 = vmatprep.subr.bf16.mxu1 %v3184_v3  ;;  %v3274_v3 = vld [vmem:[#allocation5 + $0x32c] ss:$16 sps:$4 sm:$0xff]  }
  0xa8   : > { %1198 = vmatmul.mubr.bf16.vlgmr.msra.gmra.mxu0 %v3910_v4 }
  0xa9   : > { %1251 = vmatmul.mubr.bf16.vlgmr.msra.gmra.mxu1 %v3913_v5  ;;  %1272 = vmatpush1.bf16.msra.mxu0 %v3179_v6  ;;  %v3269_v6 = vld [vmem:[#allocation5 + $0x128] ss:$16 sps:$4 sm:$0xff]  }
  0xaa   : > { %1325 = vmatpush1.bf16.msra.mxu1 %v3182_v7  ;;  %1273 = vmatprep.subr.bf16.mxu0 %v3187_v8  ;;  %v3272_v7 = vld [vmem:[#allocation5 + $0x328] ss:$16 sps:$4 sm:$0xff]   ;;  %v3277_v8 = vld [vmem:[#allocation5 + $0x10c] ss:$16 sps:$4 sm:$0xff]  }
  0xab   : > { %1326 = vmatprep.subr.bf16.mxu1 %v3190_v9  ;;  %1207 = vmatprep.mubr.bf16.mxu0 %v3918_v26  ;;  %v3280_v9 = vld [vmem:[#allocation5 + $0x30c] ss:$16 sps:$4 sm:$0xff]  }
  0xac   : > { %1260 = vmatprep.mubr.bf16.mxu1 %v3925_v28 }
  0xad   : > { %1274 = vmatpush1.bf16.msra.mxu0 %v3185_v10  ;;  %v3275_v10 = vld [vmem:[#allocation5 + $0x108] ss:$16 sps:$4 sm:$0xff]  }
  0xae   : > { %1327 = vmatpush1.bf16.msra.mxu1 %v3188_v11  ;;  %1275 = vmatprep.subr.bf16.mxu0 %v3193_v12  ;;  %v3278_v11 = vld [vmem:[#allocation5 + $0x308] ss:$16 sps:$4 sm:$0xff]  }
  0xaf   : > { %1328 = vmatprep.subr.bf16.mxu1 %v3196_v13  ;;  %v3283_v12 = vld [vmem:[#allocation8 + $0xe4] ss:$16 sps:$4 sm:$0xff]  }
  0xb0   : > { %1208 = vmatmul.mubr.bf16.gmra.mxu0 %v3921_v27  ;;  %v3286_v13 = vld [vmem:[#allocation8 + $0x2e4] ss:$16 sps:$4 sm:$0xff]  }
  0xb1   : > { %1276 = vmatpush1.bf16.msra.mxu0 %v3191_v14  ;;  %1303 = vmatprep.mubr.bf16.mxu0 %v3902_v48  ;;  %v3281_v14 = vld [vmem:[#allocation8 + $0xe0] ss:$16 sps:$4 sm:$0xff]  }
  0xb2   : > { %1329 = vmatpush1.bf16.msra.mxu1 %v3194_v15  ;;  %1277 = vmatprep.subr.bf16.mxu0 %v3199_v16  ;;  %v3284_v15 = vld [vmem:[#allocation8 + $0x2e0] ss:$16 sps:$4 sm:$0xff]   ;;  %v3289_v16 = vld [vmem:[#allocation8 + $0xc4] ss:$16 sps:$4 sm:$0xff]  }
  0xb3   : > { %1330 = vmatprep.subr.bf16.mxu1 %v3202_v17  ;;  %1261 = vmatmul.mubr.bf16.gmra.mxu1 %v3929_v33  ;;  %v3292_v17 = vld [vmem:[#allocation8 + $0x2c4] ss:$16 sps:$4 sm:$0xff]  }
  0xb4   : > { %1356 = vmatprep.mubr.bf16.mxu1 %v3905_v50 }
  0xb5   : > { %1278 = vmatpush1.bf16.msra.mxu0 %v3197_v18  ;;  %v3287_v18 = vld [vmem:[#allocation8 + $0xc0] ss:$16 sps:$4 sm:$0xff]  }
  0xb6   : > { %1331 = vmatpush1.bf16.msra.mxu1 %v3200_v19  ;;  %1279 = vmatprep.subr.bf16.mxu0 %v3205_v20  ;;  %v3290_v19 = vld [vmem:[#allocation8 + $0x2c0] ss:$16 sps:$4 sm:$0xff]   ;;  %v3295_v20 = vld [vmem:[#allocation8 + $0xa4] ss:$16 sps:$4 sm:$0xff]  }
  0xb7   : > { %1332 = vmatprep.subr.bf16.mxu1 %v3208_v21  ;;  %v3298_v21 = vld [vmem:[#allocation8 + $0x2a4] ss:$16 sps:$4 sm:$0xff]  }
  0xb9   : > { %1280 = vmatpush1.bf16.msra.mxu0 %v3203_v22  ;;  %v3293_v22 = vld [vmem:[#allocation8 + $0xa0] ss:$16 sps:$4 sm:$0xff]  }
  0xba   : > { %1333 = vmatpush1.bf16.msra.mxu1 %v3206_v23  ;;  %1281 = vmatprep.subr.bf16.mxu0 %v3211_v24  ;;  %v3296_v23 = vld [vmem:[#allocation8 + $0x2a0] ss:$16 sps:$4 sm:$0xff]   ;;  %v3301_v24 = vld [vmem:[#allocation8 + $0x84] ss:$16 sps:$4 sm:$0xff]  }
  0xbb   : > { %1334 = vmatprep.subr.bf16.mxu1 %v3214_v25  ;;  %v3304_v25 = vld [vmem:[#allocation8 + $0x284] ss:$16 sps:$4 sm:$0xff]  }
  0xbd   : > { %1282 = vmatpush1.bf16.msra.mxu0 %v3209_v29  ;;  %v3299_v29 = vld [vmem:[#allocation8 + $0x80] ss:$16 sps:$4 sm:$0xff]  }
  0xbe   : > { %1335 = vmatpush1.bf16.msra.mxu1 %v3212_v30  ;;  %1283 = vmatprep.subr.bf16.mxu0 %v3217_v31  ;;  %v3302_v30 = vld [vmem:[#allocation8 + $0x280] ss:$16 sps:$4 sm:$0xff]   ;;  %v3307_v31 = vld [vmem:[#allocation8 + $0x64] ss:$16 sps:$4 sm:$0xff]  }
  0xbf   : > { %1336 = vmatprep.subr.bf16.mxu1 %v3220_v32  ;;  %v3310_v32 = vld [vmem:[#allocation8 + $0x264] ss:$16 sps:$4 sm:$0xff]  }
  0xc1   : > { %1284 = vmatpush1.bf16.msra.mxu0 %v3215_v34  ;;  %v3305_v34 = vld [vmem:[#allocation8 + $0x60] ss:$16 sps:$4 sm:$0xff]  }
  0xc2   : > { %1337 = vmatpush1.bf16.msra.mxu1 %v3218_v35  ;;  %1285 = vmatprep.subr.bf16.mxu0 %v3223_v36  ;;  %v3308_v35 = vld [vmem:[#allocation8 + $0x260] ss:$16 sps:$4 sm:$0xff]   ;;  %v3313_v36 = vld [vmem:[#allocation8 + $0x44] ss:$16 sps:$4 sm:$0xff]  }
  0xc3   : > { %1338 = vmatprep.subr.bf16.mxu1 %v3226_v37  ;;  %v3316_v37 = vld [vmem:[#allocation8 + $0x244] ss:$16 sps:$4 sm:$0xff]  }
  0xc5   : > { %1286 = vmatpush1.bf16.msra.mxu0 %v3221_v38  ;;  %v3311_v38 = vld [vmem:[#allocation8 + $0x40] ss:$16 sps:$4 sm:$0xff]  }
  0xc6   : > { %1339 = vmatpush1.bf16.msra.mxu1 %v3224_v39  ;;  %1287 = vmatprep.subr.bf16.mxu0 %v3229_v40  ;;  %v3314_v39 = vld [vmem:[#allocation8 + $0x240] ss:$16 sps:$4 sm:$0xff]   ;;  %v3319_v40 = vld [vmem:[#allocation8 + $0x24] ss:$16 sps:$4 sm:$0xff]  }
  0xc7   : > { %1340 = vmatprep.subr.bf16.mxu1 %v3232_v41  ;;  %v3322_v41 = vld [vmem:[#allocation8 + $0x224] ss:$16 sps:$4 sm:$0xff]  }
  0xc9   : > { %1288 = vmatpush2.bf16.msra.mxu0 %v3227_v42  ;;  %v3317_v42 = vld [vmem:[#allocation8 + $0x20] ss:$16 sps:$4 sm:$0xff]  }
  0xca   : > { %1341 = vmatpush2.bf16.msra.mxu1 %v3230_v43  ;;  %1289 = vmatprep.subr.bf16.mxu0 %v3235_v44  ;;  %v3328_v43 = vld [vmem:[#allocation8 + $0x204] ss:$16 sps:$4 sm:$0xff]   ;;  %v3323_v44 = vld [vmem:[#allocation8] ss:$16 sps:$4 sm:$0xff]  }
  0xcb   : > { %1342 = vmatprep.subr.bf16.mxu1 %v3238_v45  ;;  %v3326_v45 = vld [vmem:[#allocation8 + $0x200] ss:$16 sps:$4 sm:$0xff]  }
  0xcd   : > { %1290 = vmatpush2.bf16.msra.mxu0 %v3233_v46  ;;  %v3331_v46 = vld [vmem:[#allocation8 + $0x1e4] ss:$16 sps:$4 sm:$0xff]  }
  0xce   : > { %1343 = vmatpush2.bf16.msra.mxu1 %v3236_v47  ;;  %1291 = vmatprep.subr.bf16.mxu0 %v3241_v49  ;;  %v3334_v47 = vld [vmem:[#allocation8 + $0x3e4] ss:$16 sps:$4 sm:$0xff]   ;;  %v3329_v49 = vld [vmem:[#allocation8 + $0x1e0] ss:$16 sps:$4 sm:$0xff]  }
  0xcf   : > { %1344 = vmatprep.subr.bf16.mxu1 %v3244_v51  ;;  %v3332_v51 = vld [vmem:[#allocation8 + $0x3e0] ss:$16 sps:$4 sm:$0xff]  }
  0xd1   : > { %1292 = vmatpush2.bf16.msra.mxu0 %v3239_v52  ;;  %v3337_v52 = vld [vmem:[#allocation8 + $0x1c4] ss:$16 sps:$4 sm:$0xff]  }
  0xd2   : > { %1345 = vmatpush2.bf16.msra.mxu1 %v3242_v53  ;;  %1293 = vmatprep.subr.bf16.mxu0 %v3247_v54  ;;  %v3340_v53 = vld [vmem:[#allocation8 + $0x3c4] ss:$16 sps:$4 sm:$0xff]   ;;  %v3335_v54 = vld [vmem:[#allocation8 + $0x1c0] ss:$16 sps:$4 sm:$0xff]  }
  0xd3   : > { %1346 = vmatprep.subr.bf16.mxu1 %v3250_v55  ;;  %v3338_v55 = vld [vmem:[#allocation8 + $0x3c0] ss:$16 sps:$4 sm:$0xff]  }
  0xd5   : > { %1294 = vmatpush2.bf16.msra.mxu0 %v3245_v56  ;;  %v3343_v56 = vld [vmem:[#allocation8 + $0x1a4] ss:$16 sps:$4 sm:$0xff]  }
  0xd6   : > { %1347 = vmatpush2.bf16.msra.mxu1 %v3248_v57  ;;  %1295 = vmatprep.subr.bf16.mxu0 %v3253_v58  ;;  %v3346_v57 = vld [vmem:[#allocation8 + $0x3a4] ss:$16 sps:$4 sm:$0xff]   ;;  %v3341_v58 = vld [vmem:[#allocation8 + $0x1a0] ss:$16 sps:$4 sm:$0xff]  }
  0xd7   : > { %1348 = vmatprep.subr.bf16.mxu1 %v3256_v59  ;;  %v3344_v59 = vld [vmem:[#allocation8 + $0x3a0] ss:$16 sps:$4 sm:$0xff]  }
  0xd9   : > { %1296 = vmatpush2.bf16.msra.mxu0 %v3251_v60  ;;  %v3349_v60 = vld [vmem:[#allocation8 + $0x184] ss:$16 sps:$4 sm:$0xff]  }
  0xda   : > { %1349 = vmatpush2.bf16.msra.mxu1 %v3254_v61  ;;  %1297 = vmatprep.subr.bf16.mxu0 %v3264_v62  ;;  %v3352_v61 = vld [vmem:[#allocation8 + $0x384] ss:$16 sps:$4 sm:$0xff]   ;;  %v3347_v62 = vld [vmem:[#allocation8 + $0x180] ss:$16 sps:$4 sm:$0xff]  }
  0xdb   : > { %1350 = vmatprep.subr.bf16.mxu1 %v3267_v63  ;;  %v3350_v63 = vld [vmem:[#allocation8 + $0x380] ss:$16 sps:$4 sm:$0xff]  }
  0xdd   : > { %1298 = vmatpush2.bf16.msra.mxu0 %v3262_v0  ;;  %v3355_v0 = vld [vmem:[#allocation8 + $0x164] ss:$16 sps:$4 sm:$0xff]  }
  0xde   : > { %1351 = vmatpush2.bf16.msra.mxu1 %v3265_v1  ;;  %1299 = vmatprep.subr.bf16.mxu0 %v3271_v2  ;;  %v3358_v1 = vld [vmem:[#allocation8 + $0x364] ss:$16 sps:$4 sm:$0xff]   ;;  %v3353_v2 = vld [vmem:[#allocation8 + $0x160] ss:$16 sps:$4 sm:$0xff]  }
  0xdf   : > { %1352 = vmatprep.subr.bf16.mxu1 %v3274_v3  ;;  %v3356_v3 = vld [vmem:[#allocation8 + $0x360] ss:$16 sps:$4 sm:$0xff]  }
  0xe1   : > { %1300 = vmatpush2.bf16.msra.mxu0 %v3269_v6  ;;  %v3361_v6 = vld [vmem:[#allocation8 + $0x144] ss:$16 sps:$4 sm:$0xff]  }
  0xe2   : > { %1353 = vmatpush2.bf16.msra.mxu1 %v3272_v7  ;;  %1301 = vmatprep.subr.bf16.mxu0 %v3277_v8  ;;  %v3364_v7 = vld [vmem:[#allocation8 + $0x344] ss:$16 sps:$4 sm:$0xff]   ;;  %v3359_v8 = vld [vmem:[#allocation8 + $0x140] ss:$16 sps:$4 sm:$0xff]  }
  0xe3   : > { %1354 = vmatprep.subr.bf16.mxu1 %v3280_v9  ;;  %v3362_v9 = vld [vmem:[#allocation8 + $0x340] ss:$16 sps:$4 sm:$0xff]  }
  0xe5   : > { %1302 = vmatpush2.bf16.msra.mxu0 %v3275_v10  ;;  %v3367_v10 = vld [vmem:[#allocation8 + $0x124] ss:$16 sps:$4 sm:$0xff]  }
  0xe6   : > { %1355 = vmatpush2.bf16.msra.mxu1 %v3278_v11  ;;  %2223 = vmatprep.subr.bf16.mxu0 %v3283_v12  ;;  %v3370_v11 = vld [vmem:[#allocation8 + $0x324] ss:$16 sps:$4 sm:$0xff]   ;;  %v3365_v12 = vld [vmem:[#allocation8 + $0x120] ss:$16 sps:$4 sm:$0xff]  }
  0xe7   : > { %2276 = vmatprep.subr.bf16.mxu1 %v3286_v13  ;;  %v3368_v13 = vld [vmem:[#allocation8 + $0x320] ss:$16 sps:$4 sm:$0xff]  }
  0xe8   : > { %1304 = vmatmul.mubr.bf16.vlgmr.msra.gmra.mxu0 %v3910_v4 }
  0xe9   : > { %1357 = vmatmul.mubr.bf16.vlgmr.msra.gmra.mxu1 %v3913_v5  ;;  %2224 = vmatpush1.bf16.msra.mxu0 %v3281_v14  ;;  %v3373_v14 = vld [vmem:[#allocation8 + $0x104] ss:$16 sps:$4 sm:$0xff]  }
  0xea   : > { %2277 = vmatpush1.bf16.msra.mxu1 %v3284_v15  ;;  %2225 = vmatprep.subr.bf16.mxu0 %v3289_v16  ;;  %v3376_v15 = vld [vmem:[#allocation8 + $0x304] ss:$16 sps:$4 sm:$0xff]   ;;  %v3371_v16 = vld [vmem:[#allocation8 + $0x100] ss:$16 sps:$4 sm:$0xff]  }
  0xeb   : > { %2278 = vmatprep.subr.bf16.mxu1 %v3292_v17  ;;  %1313 = vmatprep.mubr.bf16.mxu0 %v3918_v26  ;;  %v3374_v17 = vld [vmem:[#allocation8 + $0x300] ss:$16 sps:$4 sm:$0xff]  }
  0xec   : > { %1366 = vmatprep.mubr.bf16.mxu1 %v3925_v28 }
  0xed   : > { %2226 = vmatpush1.bf16.msra.mxu0 %v3287_v18  ;;  %v3379_v18 = vld [vmem:[#allocation8 + $0xec] ss:$16 sps:$4 sm:$0xff]  }
  0xee   : > { %2279 = vmatpush1.bf16.msra.mxu1 %v3290_v19  ;;  %2227 = vmatprep.subr.bf16.mxu0 %v3295_v20  ;;  %v3382_v19 = vld [vmem:[#allocation8 + $0x2ec] ss:$16 sps:$4 sm:$0xff]   ;;  %v3377_v20 = vld [vmem:[#allocation8 + $0xe8] ss:$16 sps:$4 sm:$0xff]  }
  0xef   : > { %2280 = vmatprep.subr.bf16.mxu1 %v3298_v21  ;;  %v3380_v21 = vld [vmem:[#allocation8 + $0x2e8] ss:$16 sps:$4 sm:$0xff]  }
  0xf0   : > { %1314 = vmatmul.mubr.bf16.gmra.mxu0 %v3921_v27 }
  0xf1   : > { %1367 = vmatmul.mubr.bf16.gmra.mxu1 %v3929_v33  ;;  %2228 = vmatpush1.bf16.msra.mxu0 %v3293_v22  ;;  %v3385_v22 = vld [vmem:[#allocation8 + $0xcc] ss:$16 sps:$4 sm:$0xff]  }
  0xf2   : > { %2281 = vmatpush1.bf16.msra.mxu1 %v3296_v23  ;;  %2229 = vmatprep.subr.bf16.mxu0 %v3301_v24  ;;  %v3388_v23 = vld [vmem:[#allocation8 + $0x2cc] ss:$16 sps:$4 sm:$0xff]   ;;  %v3383_v24 = vld [vmem:[#allocation8 + $0xc8] ss:$16 sps:$4 sm:$0xff]  }
  0xf3   : > { %2282 = vmatprep.subr.bf16.mxu1 %v3304_v25  ;;  %2255 = vmatprep.mubr.bf16.mxu0 %v3902_v48  ;;  %v3320_v48 = vld [vmem:[#allocation8 + $0x220] ss:$16 sps:$4 sm:$0xff]   ;;  %v3386_v25 = vld [vmem:[#allocation8 + $0x2c8] ss:$16 sps:$4 sm:$0xff]  }
  0xf4   : > { %2308 = vmatprep.mubr.bf16.mxu1 %v3905_v50  ;;  %v3325_v50 = vld [vmem:[#allocation8 + $0x4] ss:$16 sps:$4 sm:$0xff]  }
  0xf5   : > { %2230 = vmatpush1.bf16.msra.mxu0 %v3299_v29  ;;  %v3391_v29 = vld [vmem:[#allocation8 + $0xac] ss:$16 sps:$4 sm:$0xff]  }
  0xf6   : > { %2283 = vmatpush1.bf16.msra.mxu1 %v3302_v30  ;;  %2231 = vmatprep.subr.bf16.mxu0 %v3307_v31  ;;  %v3394_v30 = vld [vmem:[#allocation8 + $0x2ac] ss:$16 sps:$4 sm:$0xff]   ;;  %v3389_v31 = vld [vmem:[#allocation8 + $0xa8] ss:$16 sps:$4 sm:$0xff]  }
  0xf7   : > { %2284 = vmatprep.subr.bf16.mxu1 %v3310_v32  ;;  %v3392_v32 = vld [vmem:[#allocation8 + $0x2a8] ss:$16 sps:$4 sm:$0xff]  }
  0xf9   : > { %2232 = vmatpush1.bf16.msra.mxu0 %v3305_v34  ;;  %v3395_v34 = vld [vmem:[#allocation8 + $0x88] ss:$16 sps:$4 sm:$0xff]  }
  0xfa   : > { %2285 = vmatpush1.bf16.msra.mxu1 %v3308_v35  ;;  %2233 = vmatprep.subr.bf16.mxu0 %v3313_v36  ;;  %v3406_v35 = vld [vmem:[#allocation8 + $0x26c] ss:$16 sps:$4 sm:$0xff]   ;;  %v3473_v36 = vld [vmem:[%s3887_s12 + $0x4] ss:$16 sps:$4 sm:$0xff]  }
  0xfb   : > { %2286 = vmatprep.subr.bf16.mxu1 %v3316_v37  ;;  %v3474_v37 = vld [vmem:[%s3887_s12 + $0xc] ss:$16 sps:$4 sm:$0xff]  }
  0xfd   : > { %2234 = vmatpush1.bf16.msra.mxu0 %v3311_v38  ;;  %v3401_v38 = vld [vmem:[#allocation8 + $0x68] ss:$16 sps:$4 sm:$0xff]  }
  0xfe   : > { %2287 = vmatpush1.bf16.msra.mxu1 %v3314_v39  ;;  %2235 = vmatprep.subr.bf16.mxu0 %v3319_v40  ;;  %v3404_v39 = vld [vmem:[#allocation8 + $0x268] ss:$16 sps:$4 sm:$0xff]  }
  0xff   : > { %2288 = vmatprep.subr.bf16.mxu1 %v3322_v41  ;;  %v3407_v40 = vld [vmem:[#allocation8 + $0x48] ss:$16 sps:$4 sm:$0xff]  }
 0x100   : > { %v3410_v41 = vld [vmem:[#allocation8 + $0x248] ss:$16 sps:$4 sm:$0xff]  }
 0x101   : > { %2236 = vmatpush1.bf16.msra.mxu0 %v3317_v42  ;;  %v3415_v42 = vld [vmem:[#allocation8 + $0x2c] ss:$16 sps:$4 sm:$0xff]  }
 0x102   : > { %2289 = vmatpush1.bf16.msra.mxu1 %v3320_v48  ;;  %2237 = vmatprep.subr.bf16.mxu0 %v3325_v50  ;;  %v3418_v48 = vld [vmem:[#allocation8 + $0x22c] ss:$16 sps:$4 sm:$0xff]   ;;  %v3413_v50 = vld [vmem:[#allocation8 + $0x28] ss:$16 sps:$4 sm:$0xff]  }
 0x103   : > { %2290 = vmatprep.subr.bf16.mxu1 %v3328_v43  ;;  %v3416_v43 = vld [vmem:[#allocation8 + $0x228] ss:$16 sps:$4 sm:$0xff]  }
 0x105   : > { %2238 = vmatpush1.bf16.msra.mxu0 %v3323_v44  ;;  %v3421_v44 = vld [vmem:[#allocation8 + $0xc] ss:$16 sps:$4 sm:$0xff]  }
 0x106   : > { %2291 = vmatpush1.bf16.msra.mxu1 %v3326_v45  ;;  %2239 = vmatprep.subr.bf16.mxu0 %v3331_v46  ;;  %v3424_v45 = vld [vmem:[#allocation8 + $0x20c] ss:$16 sps:$4 sm:$0xff]   ;;  %v3419_v46 = vld [vmem:[#allocation8 + $0x8] ss:$16 sps:$4 sm:$0xff]  }
 0x107   : > { %2292 = vmatprep.subr.bf16.mxu1 %v3334_v47  ;;  %v3422_v47 = vld [vmem:[#allocation8 + $0x208] ss:$16 sps:$4 sm:$0xff]  }
 0x109   : > { %2240 = vmatpush2.bf16.msra.mxu0 %v3329_v49  ;;  %v3427_v49 = vld [vmem:[#allocation8 + $0x1ec] ss:$16 sps:$4 sm:$0xff]  }
 0x10a   : > { %2293 = vmatpush2.bf16.msra.mxu1 %v3332_v51  ;;  %2241 = vmatprep.subr.bf16.mxu0 %v3337_v52  ;;  %v3430_v51 = vld [vmem:[#allocation8 + $0x3ec] ss:$16 sps:$4 sm:$0xff]   ;;  %v3425_v52 = vld [vmem:[#allocation8 + $0x1e8] ss:$16 sps:$4 sm:$0xff]  }
 0x10b   : > { %2294 = vmatprep.subr.bf16.mxu1 %v3340_v53  ;;  %v3428_v53 = vld [vmem:[#allocation8 + $0x3e8] ss:$16 sps:$4 sm:$0xff]  }
 0x10d   : > { %2242 = vmatpush2.bf16.msra.mxu0 %v3335_v54  ;;  %v3433_v54 = vld [vmem:[#allocation8 + $0x1cc] ss:$16 sps:$4 sm:$0xff]  }
 0x10e   : > { %2295 = vmatpush2.bf16.msra.mxu1 %v3338_v55  ;;  %2243 = vmatprep.subr.bf16.mxu0 %v3343_v56  ;;  %v3436_v55 = vld [vmem:[#allocation8 + $0x3cc] ss:$16 sps:$4 sm:$0xff]   ;;  %v3431_v56 = vld [vmem:[#allocation8 + $0x1c8] ss:$16 sps:$4 sm:$0xff]  }
 0x10f   : > { %2296 = vmatprep.subr.bf16.mxu1 %v3346_v57  ;;  %v3434_v57 = vld [vmem:[#allocation8 + $0x3c8] ss:$16 sps:$4 sm:$0xff]  }
 0x111   : > { %2244 = vmatpush2.bf16.msra.mxu0 %v3341_v58  ;;  %v3439_v58 = vld [vmem:[#allocation8 + $0x1ac] ss:$16 sps:$4 sm:$0xff]  }
 0x112   : > { %2297 = vmatpush2.bf16.msra.mxu1 %v3344_v59  ;;  %2245 = vmatprep.subr.bf16.mxu0 %v3349_v60  ;;  %v3442_v59 = vld [vmem:[#allocation8 + $0x3ac] ss:$16 sps:$4 sm:$0xff]   ;;  %v3437_v60 = vld [vmem:[#allocation8 + $0x1a8] ss:$16 sps:$4 sm:$0xff]  }
 0x113   : > { %2298 = vmatprep.subr.bf16.mxu1 %v3352_v61  ;;  %v3440_v61 = vld [vmem:[#allocation8 + $0x3a8] ss:$16 sps:$4 sm:$0xff]  }
 0x115   : > { %2246 = vmatpush2.bf16.msra.mxu0 %v3347_v62  ;;  %v3445_v62 = vld [vmem:[#allocation8 + $0x18c] ss:$16 sps:$4 sm:$0xff]  }
 0x116   : > { %2299 = vmatpush2.bf16.msra.mxu1 %v3350_v63  ;;  %2247 = vmatprep.subr.bf16.mxu0 %v3355_v0  ;;  %v3448_v63 = vld [vmem:[#allocation8 + $0x38c] ss:$16 sps:$4 sm:$0xff]   ;;  %v3443_v0 = vld [vmem:[#allocation8 + $0x188] ss:$16 sps:$4 sm:$0xff]  }
 0x117   : > { %2300 = vmatprep.subr.bf16.mxu1 %v3358_v1  ;;  %v3446_v1 = vld [vmem:[#allocation8 + $0x388] ss:$16 sps:$4 sm:$0xff]  }
 0x119   : > { %2248 = vmatpush2.bf16.msra.mxu0 %v3353_v2  ;;  %v3451_v2 = vld [vmem:[#allocation8 + $0x16c] ss:$16 sps:$4 sm:$0xff]  }
 0x11a   : > { %2301 = vmatpush2.bf16.msra.mxu1 %v3356_v3  ;;  %2249 = vmatprep.subr.bf16.mxu0 %v3361_v6  ;;  %v3454_v3 = vld [vmem:[#allocation8 + $0x36c] ss:$16 sps:$4 sm:$0xff]   ;;  %v3449_v6 = vld [vmem:[#allocation8 + $0x168] ss:$16 sps:$4 sm:$0xff]  }
 0x11b   : > { %2302 = vmatprep.subr.bf16.mxu1 %v3364_v7  ;;  %v3452_v7 = vld [vmem:[#allocation8 + $0x368] ss:$16 sps:$4 sm:$0xff]  }
 0x11d   : > { %2250 = vmatpush2.bf16.msra.mxu0 %v3359_v8  ;;  %v3457_v8 = vld [vmem:[#allocation8 + $0x14c] ss:$16 sps:$4 sm:$0xff]  }
 0x11e   : > { %2303 = vmatpush2.bf16.msra.mxu1 %v3362_v9  ;;  %2251 = vmatprep.subr.bf16.mxu0 %v3367_v10  ;;  %v3460_v9 = vld [vmem:[#allocation8 + $0x34c] ss:$16 sps:$4 sm:$0xff]   ;;  %v3455_v10 = vld [vmem:[#allocation8 + $0x148] ss:$16 sps:$4 sm:$0xff]  }
 0x11f   : > { %2304 = vmatprep.subr.bf16.mxu1 %v3370_v11  ;;  %v3458_v11 = vld [vmem:[#allocation8 + $0x348] ss:$16 sps:$4 sm:$0xff]  }
 0x121   : > { %2252 = vmatpush2.bf16.msra.mxu0 %v3365_v12  ;;  %v465_v12 = vlaneseq }
 0x122   : > { %2305 = vmatpush2.bf16.msra.mxu1 %v3368_v13  ;;  %2253 = vmatprep.subr.bf16.mxu0 %v3373_v14  ;;  %v3463_v13 = vld [vmem:[#allocation8 + $0x12c] ss:$16 sps:$4 sm:$0xff]  }
 0x123   : > { %2306 = vmatprep.subr.bf16.mxu1 %v3376_v15  ;;  %v3466_v14 = vld [vmem:[#allocation8 + $0x32c] ss:$16 sps:$4 sm:$0xff]   ;;  %v3461_v15 = vld [vmem:[#allocation8 + $0x128] ss:$16 sps:$4 sm:$0xff]  }
 0x125   : > { %2254 = vmatpush2.bf16.msra.mxu0 %v3371_v16  ;;  %v3464_v16 = vld [vmem:[#allocation8 + $0x328] ss:$16 sps:$4 sm:$0xff]  }
 0x126   : > { %2307 = vmatpush2.bf16.msra.mxu1 %v3374_v17  ;;  %2329 = vmatprep.subr.bf16.mxu0 %v3379_v18  ;;  %v3951_v17 = vshrl.u32 %v465_v12, 7  ;;  %v3469_v18 = vld [vmem:[#allocation8 + $0x10c] ss:$16 sps:$4 sm:$0xff]  }
 0x127   : > { %2382 = vmatprep.subr.bf16.mxu1 %v3382_v19  ;;  %v3472_v19 = vld [vmem:[#allocation8 + $0x30c] ss:$16 sps:$4 sm:$0xff]  }
 0x128   : > { %2256 = vmatmul.mubr.bf16.vlgmr.msra.gmra.mxu0 %v3910_v4  ;;  %v3397_v4 = vld [vmem:[#allocation8 + $0x8c] ss:$16 sps:$4 sm:$0xff]  }
 0x129   : > { %2309 = vmatmul.mubr.bf16.vlgmr.msra.gmra.mxu1 %v3913_v5  ;;  %2330 = vmatpush1.bf16.msra.mxu0 %v3377_v20  ;;  %v3400_v5 = vld [vmem:[#allocation8 + $0x28c] ss:$16 sps:$4 sm:$0xff]   ;;  %v3467_v20 = vld [vmem:[#allocation8 + $0x108] ss:$16 sps:$4 sm:$0xff]  }
 0x12a   : > { %2383 = vmatpush1.bf16.msra.mxu1 %v3380_v21  ;;  %2331 = vmatprep.subr.bf16.mxu0 %v3385_v22  ;;  %v3470_v21 = vld [vmem:[#allocation8 + $0x308] ss:$16 sps:$4 sm:$0xff]   ;;  %v467_v22 = vsub.s32 0, %v3951_v17 }
 0x12b   : > { %2384 = vmatprep.subr.bf16.mxu1 %v3388_v23  ;;  %2265 = vmatprep.mubr.bf16.mxu0 %v3918_v26  ;;  %v3398_v26 = vld [vmem:[#allocation8 + $0x288] ss:$16 sps:$4 sm:$0xff]   ;;  %v463_v23 = vld [vmem:[#allocation7] sm:$0xf] }
 0x12c   : > { %2318 = vmatprep.mubr.bf16.mxu1 %v3925_v28  ;;  %v3403_v28 = vld [vmem:[#allocation8 + $0x6c] ss:$16 sps:$4 sm:$0xff]  }
 0x12d   : > { %2332 = vmatpush1.bf16.msra.mxu0 %v3383_v24  ;;  %v471_v24 = vsub.s32 1, %v3951_v17 }
 0x12e   : > { %2385 = vmatpush1.bf16.msra.mxu1 %v3386_v25  ;;  %2333 = vmatprep.subr.bf16.mxu0 %v3391_v29  ;;  %v468_v25 = vrot.slane %v463_v23, %v467_v22 }
 0x12f   : > { %2386 = vmatprep.subr.bf16.mxu1 %v3394_v30  ;;  %v472_v29 = vrot.slane %v463_v23, %v471_v24 }
 0x130   : > { %2266 = vmatmul.mubr.bf16.gmra.mxu0 %v3921_v27  ;;  %v3409_v27 = vld [vmem:[#allocation8 + $0x4c] ss:$16 sps:$4 sm:$0xff]  }
 0x131   : > { %2319 = vmatmul.mubr.bf16.gmra.mxu1 %v3929_v33  ;;  %2334 = vmatpush1.bf16.msra.mxu0 %v3389_v31  ;;  %v3412_v33 = vld [vmem:[#allocation8 + $0x24c] ss:$16 sps:$4 sm:$0xff]  }
 0x132   : > { %2387 = vmatpush1.bf16.msra.mxu1 %v3392_v32  ;;  %2335 = vmatprep.subr.bf16.mxu0 %v3397_v4  ;;  %v3475_v32 = vld [vmem:[%s3887_s12] ss:$16 sps:$4 sm:$0xff]   ;;  %v3476_v4 = vld [vmem:[%s3887_s12 + $0x8] ss:$16 sps:$4 sm:$0xff]  }
 0x133   : > { %2388 = vmatprep.subr.bf16.mxu1 %v3400_v5  ;;  %2361 = vmatprep.mubr.bf16.mxu0 %v3473_v36 }
 0x134   : > { %2414 = vmatprep.mubr.bf16.mxu1 %v3474_v37 }
 0x135   : > { %2336 = vmatpush1.bf16.msra.mxu0 %v3395_v34  ;;  %v3477_v34 = vld [vmem:[%s3887_s12 + $0x24] ss:$16 sps:$4 sm:$0xff]  }
 0x136   : > { %2389 = vmatpush1.bf16.msra.mxu1 %v3398_v26  ;;  %2337 = vmatprep.subr.bf16.mxu0 %v3403_v28  ;;  %v3478_v26 = vld [vmem:[%s3887_s12 + $0x2c] ss:$16 sps:$4 sm:$0xff]  }
 0x137   : > { %2390 = vmatprep.subr.bf16.mxu1 %v3406_v35 }
 0x139   : > { %2338 = vmatpush1.bf16.msra.mxu0 %v3401_v38 }
 0x13a   : > { %2391 = vmatpush1.bf16.msra.mxu1 %v3404_v39  ;;  %2339 = vmatprep.subr.bf16.mxu0 %v3409_v27 }
 0x13b   : > { %2392 = vmatprep.subr.bf16.mxu1 %v3412_v33 }
 0x13d   : > { %2340 = vmatpush1.bf16.msra.mxu0 %v3407_v40 }
 0x13e   : > { %2393 = vmatpush1.bf16.msra.mxu1 %v3410_v41  ;;  %2341 = vmatprep.subr.bf16.mxu0 %v3415_v42 }
 0x13f   : > { %2394 = vmatprep.subr.bf16.mxu1 %v3418_v48 }
 0x141   : > { %2342 = vmatpush1.bf16.msra.mxu0 %v3413_v50  ;;  %v3479_v50 = vld [vmem:[%s3887_s12 + $0x20] ss:$16 sps:$4 sm:$0xff]  }
 0x142   : > { %2395 = vmatpush1.bf16.msra.mxu1 %v3416_v43  ;;  %2343 = vmatprep.subr.bf16.mxu0 %v3421_v44  ;;  %v3480_v43 = vld [vmem:[%s3887_s12 + $0x28] ss:$16 sps:$4 sm:$0xff]  }
 0x143   : > { %2396 = vmatprep.subr.bf16.mxu1 %v3424_v45 }
 0x145   : > { %2344 = vmatpush1.bf16.msra.mxu0 %v3419_v46 }
 0x146   : > { %2397 = vmatpush1.bf16.msra.mxu1 %v3422_v47  ;;  %2345 = vmatprep.subr.bf16.mxu0 %v3427_v49 }
 0x147   : > { %2398 = vmatprep.subr.bf16.mxu1 %v3430_v51 }
 0x149   : > { %2346 = vmatpush2.bf16.msra.mxu0 %v3425_v52 }
 0x14a   : > { %2399 = vmatpush2.bf16.msra.mxu1 %v3428_v53  ;;  %2347 = vmatprep.subr.bf16.mxu0 %v3433_v54 }
 0x14b   : > { %2400 = vmatprep.subr.bf16.mxu1 %v3436_v55 }
 0x14d   : > { %2348 = vmatpush2.bf16.msra.mxu0 %v3431_v56 }
 0x14e   : > { %2401 = vmatpush2.bf16.msra.mxu1 %v3434_v57  ;;  %2349 = vmatprep.subr.bf16.mxu0 %v3439_v58 }
 0x14f   : > { %2402 = vmatprep.subr.bf16.mxu1 %v3442_v59 }
 0x151   : > { %2350 = vmatpush2.bf16.msra.mxu0 %v3437_v60 }
 0x152   : > { %2403 = vmatpush2.bf16.msra.mxu1 %v3440_v61  ;;  %2351 = vmatprep.subr.bf16.mxu0 %v3445_v62 }
 0x153   : > { %2404 = vmatprep.subr.bf16.mxu1 %v3448_v63 }
 0x155   : > { %2352 = vmatpush2.bf16.msra.mxu0 %v3443_v0 }
 0x156   : > { %2405 = vmatpush2.bf16.msra.mxu1 %v3446_v1  ;;  %2353 = vmatprep.subr.bf16.mxu0 %v3451_v2 }
 0x157   : > { %2406 = vmatprep.subr.bf16.mxu1 %v3454_v3  ;;  %v475_v3 = vsub.s32 2, %v3951_v17 }
 0x159   : > { %2354 = vmatpush2.bf16.msra.mxu0 %v3449_v6  ;;  %v479_v6 = vsub.s32 3, %v3951_v17 }
 0x15a   : > { %2407 = vmatpush2.bf16.msra.mxu1 %v3452_v7  ;;  %2355 = vmatprep.subr.bf16.mxu0 %v3457_v8  ;;  %v476_v7 = vrot.slane %v463_v23, %v475_v3 }
 0x15b   : > { %2408 = vmatprep.subr.bf16.mxu1 %v3460_v9  ;;  %v480_v8 = vrot.slane %v463_v23, %v479_v6 }
 0x15d   : > { %2356 = vmatpush2.bf16.msra.mxu0 %v3455_v10 }
 0x15e   : > { %2409 = vmatpush2.bf16.msra.mxu1 %v3458_v11  ;;  %2357 = vmatprep.subr.bf16.mxu0 %v3463_v13 }
 0x15f   : > { %2410 = vmatprep.subr.bf16.mxu1 %v3466_v14 }
 0x161   : > { %2358 = vmatpush2.bf16.msra.mxu0 %v3461_v15 }
 0x162   : > { %2411 = vmatpush2.bf16.msra.mxu1 %v3464_v16  ;;  %2359 = vmatprep.subr.bf16.mxu0 %v3469_v18 }
 0x163   : > { %2412 = vmatprep.subr.bf16.mxu1 %v3472_v19 }
 0x165   : > { %2360 = vmatpush2.bf16.msra.mxu0 %v3467_v20 }
 0x166   : > { %2413 = vmatpush2.bf16.msra.mxu1 %v3470_v21 }
 0x168   : > { %v1199_v30 = vpop.f32.mrf.mxu0  ;;  %2362 = vmatmul.mubr.bf16.vlgmr.msra.gmra.mxu0 %v3475_v32 }
 0x169   : > { %v1252_v31 = vpop.f32.mrf.mxu1  ;;  %2415 = vmatmul.mubr.bf16.vlgmr.msra.gmra.mxu1 %v3476_v4  ;;  %v1200_v5 = vadd.f32 %v1199_v30, %v468_v25  ;;  %2371 = vmatprep.mubr.bf16.mxu0 %v3477_v34 }
 0x16a   : > { %2424 = vmatprep.mubr.bf16.mxu1 %v3478_v26  ;;  %v1201_v28 = vpop.f32.mrf.mxu0 }
 0x16b   : > { %v1254_v35 = vpop.f32.mrf.mxu1  ;;  %v1253_v36 = vadd.f32 %v1252_v31, %v1200_v5  ;;  %v1202_v37 = vadd.f32 %v1201_v28, %v472_v29 }
 0x16c   : > { %v1203_v38 = vpop.f32.mrf.mxu0 }
 0x16d   : > { %v1256_v39 = vpop.f32.mrf.mxu1  ;;  %v1255_v27 = vadd.f32 %v1254_v35, %v1202_v37  ;;  %v1204_v33 = vadd.f32 %v1203_v38, %v468_v25 }
 0x16e   : > { %v1205_v40 = vpop.f32.mrf.mxu0 }
 0x16f   : > { %v2971_v41 = vpack.c.bf16 %v1255_v27, %v1253_v36  ;;  %v1206_v42 = vadd.f32 %v1205_v40, %v472_v29  ;;  %v1258_v48 = vpop.f32.mrf.mxu1  ;;  %v1257_v44 = vadd.f32 %v1256_v39, %v1204_v33 }
 0x170   : > { %2372 = vmatmul.mubr.bf16.gmra.mxu0 %v3479_v50  ;;  %v1209_v47 = vpop.f32.mrf.mxu0 }
 0x171   : > { %2425 = vmatmul.mubr.bf16.gmra.mxu1 %v3480_v43  ;;  %1425 = vst [vmem:[%s3966_s27] sm:$0xff] %v2971_v41  ;;  %v1259_v45 = vadd.f32 %v1258_v48, %v1206_v42  ;;  %v1210_v49 = vadd.f32 %v1209_v47, %v468_v25 }
 0x172   : > { %v1211_v51 = vpop.f32.mrf.mxu0 }
 0x173   : > { %v2973_v46 = vpack.c.bf16 %v1259_v45, %v1257_v44  ;;  %v1212_v52 = vadd.f32 %v1211_v51, %v472_v29  ;;  %v1262_v53 = vpop.f32.mrf.mxu1 }
 0x174   : > { %v1213_v54 = vpop.f32.mrf.mxu0  ;;  %v1263_v55 = vadd.f32 %v1262_v53, %v1210_v49 }
 0x175   : > { %1427 = vst [vmem:[%s3966_s27 + $0x10] sm:$0xff] %v2973_v46  ;;  %v1214_v56 = vadd.f32 %v1213_v54, %v468_v25  ;;  %v1264_v57 = vpop.f32.mrf.mxu1 }
 0x176   : > { %v1215_v58 = vpop.f32.mrf.mxu0  ;;  %v1265_v59 = vadd.f32 %v1264_v57, %v1212_v52 }
 0x177   : > { %v1216_v60 = vadd.f32 %v1215_v58, %v472_v29  ;;  %v1266_v61 = vpop.f32.mrf.mxu1 }
 0x178   : > { %v2975_v62 = vpack.c.bf16 %v1265_v59, %v1263_v55  ;;  %v1267_v63 = vadd.f32 %v1266_v61, %v1214_v56 }
 0x179   : > { %v1268_v0 = vpop.f32.mrf.mxu1 }
 0x17a   : > { %1429 = vst [vmem:[%s3966_s27 + $0x20] sm:$0xff] %v2975_v62  ;;  %v1269_v1 = vadd.f32 %v1268_v0, %v1216_v60 }
 0x17c   : > { %v2977_v2 = vpack.c.bf16 %v1269_v1, %v1267_v63 }
 0x17e   : > { %1431 = vst [vmem:[%s3966_s27 + $0x30] sm:$0xff] %v2977_v2 }
 0x1a8   : > { %v1305_v9 = vpop.f32.mrf.mxu0 }
 0x1a9   : > { %v1358_v10 = vpop.f32.mrf.mxu1  ;;  %v1306_v11 = vadd.f32 %v1305_v9, %v476_v7 }
 0x1aa   : > { %v1307_v12 = vpop.f32.mrf.mxu0 }
 0x1ab   : > { %v1360_v13 = vpop.f32.mrf.mxu1  ;;  %v1359_v14 = vadd.f32 %v1358_v10, %v1306_v11  ;;  %v1308_v15 = vadd.f32 %v1307_v12, %v480_v8 }
 0x1ac   : > { %v1309_v16 = vpop.f32.mrf.mxu0 }
 0x1ad   : > { %v1362_v18 = vpop.f32.mrf.mxu1  ;;  %v1361_v19 = vadd.f32 %v1360_v13, %v1308_v15  ;;  %v1310_v20 = vadd.f32 %v1309_v16, %v476_v7 }
 0x1ae   : > { %v1311_v21 = vpop.f32.mrf.mxu0 }
 0x1af   : > { %v1364_v25 = vpop.f32.mrf.mxu1  ;;  %v2972_v29 = vpack.c.bf16 %v1361_v19, %v1359_v14  ;;  %v1312_v30 = vadd.f32 %v1311_v21, %v480_v8  ;;  %v1363_v23 = vadd.f32 %v1362_v18, %v1310_v20 }
 0x1b0   : > { %v1315_v31 = vpop.f32.mrf.mxu0 }
 0x1b1   : > { %v1368_v32 = vpop.f32.mrf.mxu1  ;;  %1426 = vst [vmem:[%s3966_s27 + $0x8] sm:$0xff] %v2972_v29  ;;  %v1365_v4 = vadd.f32 %v1364_v25, %v1312_v30  ;;  %v1316_v5 = vadd.f32 %v1315_v31, %v476_v7 }
 0x1b2   : > { %v1317_v34 = vpop.f32.mrf.mxu0 }
 0x1b3   : > { %v1370_v26 = vpop.f32.mrf.mxu1  ;;  %v2974_v28 = vpack.c.bf16 %v1365_v4, %v1363_v23  ;;  %v1318_v35 = vadd.f32 %v1317_v34, %v480_v8  ;;  %v1369_v36 = vadd.f32 %v1368_v32, %v1316_v5 }
 0x1b4   : > { %v1319_v37 = vpop.f32.mrf.mxu0 }
 0x1b5   : > { %v1372_v38 = vpop.f32.mrf.mxu1  ;;  %1428 = vst [vmem:[%s3966_s27 + $0x18] sm:$0xff] %v2974_v28  ;;  %v1320_v39 = vadd.f32 %v1319_v37, %v476_v7  ;;  %v1371_v27 = vadd.f32 %v1370_v26, %v1318_v35 }
 0x1b6   : > { %v1321_v33 = vpop.f32.mrf.mxu0 }
 0x1b7   : > { %v1374_v40 = vpop.f32.mrf.mxu1  ;;  %v2976_v41 = vpack.c.bf16 %v1371_v27, %v1369_v36  ;;  %v1322_v42 = vadd.f32 %v1321_v33, %v480_v8  ;;  %v1373_v48 = vadd.f32 %v1372_v38, %v1320_v39 }
 0x1b9   : > { %1430 = vst [vmem:[%s3966_s27 + $0x28] sm:$0xff] %v2976_v41  ;;  %v1375_v50 = vadd.f32 %v1374_v40, %v1322_v42 }
 0x1bb   : > { %v2978_v43 = vpack.c.bf16 %v1375_v50, %v1373_v48 }
 0x1bd   : > { %1432 = vst [vmem:[%s3966_s27 + $0x38] sm:$0xff] %v2978_v43 }
 0x1be   : > { %3600 = shalt.err (!%p3597_p13)
}
 0x1bf   : > { %s3601_s7 = scalar_lea.hbm %s3991_s19, 1024  ;;  %s3605_s30 = scalar_lea.hbm %s4098_s5, 2048 }
 0x1c0   : > { %p3602_p9 = scmp.ne.s32.totalorder %s3991_s19, %s3601_s7  ;;  %p3606_p11 = scmp.lt.s32.totalorder %s3991_s19, %s4098_s5 }
 0x1c1   : > { %p3607_p0 = scmp.lt.s32.totalorder %s3605_s30, %s3601_s7 }
 0x1c2   : > { %p3603_p8 = pnand %p3602_p9, %p4121_p2 }
 0x1c3   : > { %p3608_p3 = por %p3607_p0, %p3606_p11 }
 0x1c4   : > { %p3604_p10 = pneg %p3603_p8 }
 0x1c6   : > { %p3609_p1 = pnand %p3608_p3, %p3604_p10 }
 0x1c8   : > { %3612 = shalt.err (!%p3609_p1)
}
 0x1c9   : > { %s3698_s16 = smov 256   ;;  %s3699_s10 = smov 16   ;;  %v1561_v44 = vld [vmem:[%s4097_s4] sm:$0xf] }
 0x1ca   : > { %3005 = dma.vmem_to_hbm [thread:$0]  (%p4121_p2), %s3982_s29, 1024, %s3991_s19, %s2492_s26, %s3698_s16, %s3698_s16, %s3699_s10   ;;  %v1566_v45 = vrot.slane %v1561_v44, %v467_v22  ;;  %v1570_v46 = vrot.slane %v1561_v44, %v471_v24  ;;  %v1574_v30 = vrot.slane %v1561_v44, %v475_v3  ;;  %v1578_v31 = vrot.slane %v1561_v44, %v479_v6 }
 0x1cb   : > { %s4027_s29 = scalar_lea.vmem [#allocation11], %s3883_s15  ;;  %s4048_s7 = scalar_lea.hbm %s4099_s6, %s2988_s20 }
 0x1cc   : > { %s2528_s15 = sshll.u32 %s4027_s29, 4  ;;  %s2497_s27 = scalar_lea.sflag [#allocation12], %s3880_s14  ;;  %s4041_s15 = int_to_ptr.vmem [resolvable:$true] %s2528_s15 }
 0x1cd   : > { %s3613_s30 = scalar_lea.vmem %s4041_s15, 1024  ;;  %s3700_s8 = smov [#allocation11]  }
 0x1ce   : > { %p3614_p4 = scmp.ne.s32.totalorder %s4041_s15, %s3613_s30  ;;  %s3617_s17 = sshll.u32 %s3700_s8, 4  ;;  %s3618_s17 = int_to_ptr.vmem [resolvable:$false] %s3617_s17 }
 0x1cf   : > { %s3619_s18 = scalar_lea.vmem %s3618_s17, 2048  ;;  %p3620_p5 = scmp.lt.s32.totalorder %s4041_s15, %s3618_s17 }
 0x1d0   : > { %p3615_p6 = pnand %p3614_p4, %p4121_p2  ;;  %p3621_p7 = scmp.lt.s32.totalorder %s3619_s18, %s3613_s30 }
 0x1d2   : > { %p3616_p12 = pneg %p3615_p6  ;;  %p3622_p13 = por %p3621_p7, %p3620_p5 }
 0x1d4   : > { %p3623_p9 = pnand %p3622_p13, %p3616_p12 }
 0x1e8   : > { %v2257_v47 = vpop.f32.mrf.mxu0 }
 0x1e9   : > { %v2310_v49 = vpop.f32.mrf.mxu1  ;;  %v2258_v51 = vadd.f32 %v2257_v47, %v1566_v45 }
 0x1ea   : > { %v2259_v52 = vpop.f32.mrf.mxu0 }
 0x1eb   : > { %v2312_v53 = vpop.f32.mrf.mxu1  ;;  %v2311_v54 = vadd.f32 %v2310_v49, %v2258_v51  ;;  %v2260_v55 = vadd.f32 %v2259_v52, %v1570_v46 }
 0x1ec   : > { %v2261_v56 = vpop.f32.mrf.mxu0 }
 0x1ed   : > { %v2314_v57 = vpop.f32.mrf.mxu1  ;;  %v2313_v58 = vadd.f32 %v2312_v53, %v2260_v55  ;;  %v2262_v59 = vadd.f32 %v2261_v56, %v1566_v45 }
 0x1ee   : > { %v2263_v60 = vpop.f32.mrf.mxu0 }
 0x1ef   : > { %v2316_v61 = vpop.f32.mrf.mxu1  ;;  %v2979_v62 = vpack.c.bf16 %v2313_v58, %v2311_v54  ;;  %v2264_v63 = vadd.f32 %v2263_v60, %v1570_v46  ;;  %v2315_v24 = vadd.f32 %v2314_v57, %v2262_v59 }
 0x1f0   : > { %v2267_v22 = vpop.f32.mrf.mxu0 }
 0x1f1   : > { %v2320_v0 = vpop.f32.mrf.mxu1  ;;  %2483 = vst [vmem:[%s4027_s29] sm:$0xff] %v2979_v62  ;;  %v2317_v1 = vadd.f32 %v2316_v61, %v2264_v63  ;;  %v2268_v2 = vadd.f32 %v2267_v22, %v1566_v45 }
 0x1f2   : > { %v2269_v7 = vpop.f32.mrf.mxu0 }
 0x1f3   : > { %v2322_v8 = vpop.f32.mrf.mxu1  ;;  %v2981_v9 = vpack.c.bf16 %v2317_v1, %v2315_v24  ;;  %v2270_v10 = vadd.f32 %v2269_v7, %v1570_v46  ;;  %v2321_v11 = vadd.f32 %v2320_v0, %v2268_v2 }
 0x1f4   : > { %v2271_v12 = vpop.f32.mrf.mxu0 }
 0x1f5   : > { %v2324_v13 = vpop.f32.mrf.mxu1  ;;  %2485 = vst [vmem:[%s4027_s29 + $0x10] sm:$0xff] %v2981_v9  ;;  %v2272_v14 = vadd.f32 %v2271_v12, %v1566_v45  ;;  %v2323_v15 = vadd.f32 %v2322_v8, %v2270_v10 }
 0x1f6   : > { %v2273_v16 = vpop.f32.mrf.mxu0 }
 0x1f7   : > { %v2326_v18 = vpop.f32.mrf.mxu1  ;;  %v2983_v19 = vpack.c.bf16 %v2323_v15, %v2321_v11  ;;  %v2274_v20 = vadd.f32 %v2273_v16, %v1570_v46  ;;  %v2325_v21 = vadd.f32 %v2324_v13, %v2272_v14 }
 0x1f9   : > { %2487 = vst [vmem:[%s4027_s29 + $0x20] sm:$0xff] %v2983_v19  ;;  %v2327_v25 = vadd.f32 %v2326_v18, %v2274_v20 }
 0x1fb   : > { %v2985_v29 = vpack.c.bf16 %v2327_v25, %v2325_v21 }
 0x1fd   : > { %2489 = vst [vmem:[%s4027_s29 + $0x30] sm:$0xff] %v2985_v29 }
 0x228   : > { %v2363_v32 = vpop.f32.mrf.mxu0 }
 0x229   : > { %v2416_v23 = vpop.f32.mrf.mxu1  ;;  %v2364_v4 = vadd.f32 %v2363_v32, %v1574_v30 }
 0x22a   : > { %v2365_v5 = vpop.f32.mrf.mxu0 }
 0x22b   : > { %v2418_v34 = vpop.f32.mrf.mxu1  ;;  %v2366_v26 = vadd.f32 %v2365_v5, %v1578_v31  ;;  %v2417_v36 = vadd.f32 %v2416_v23, %v2364_v4 }
 0x22c   : > { %v2367_v28 = vpop.f32.mrf.mxu0 }
 0x22d   : > { %v2420_v35 = vpop.f32.mrf.mxu1  ;;  %v2419_v37 = vadd.f32 %v2418_v34, %v2366_v26  ;;  %v2368_v38 = vadd.f32 %v2367_v28, %v1574_v30 }
 0x22e   : > { %v2369_v39 = vpop.f32.mrf.mxu0 }
 0x22f   : > { %v2422_v27 = vpop.f32.mrf.mxu1  ;;  %v2980_v33 = vpack.c.bf16 %v2419_v37, %v2417_v36  ;;  %v2370_v3 = vadd.f32 %v2369_v39, %v1578_v31  ;;  %v2421_v6 = vadd.f32 %v2420_v35, %v2368_v38 }
 0x230   : > { %v2373_v40 = vpop.f32.mrf.mxu0 }
 0x231   : > { %v2426_v17 = vpop.f32.mrf.mxu1  ;;  %2484 = vst [vmem:[%s4027_s29 + $0x8] sm:$0xff] %v2980_v33  ;;  %v2423_v41 = vadd.f32 %v2422_v27, %v2370_v3  ;;  %v2374_v42 = vadd.f32 %v2373_v40, %v1574_v30 }
 0x232   : > { %v2375_v48 = vpop.f32.mrf.mxu0 }
 0x233   : > { %v2428_v50 = vpop.f32.mrf.mxu1  ;;  %v2982_v43 = vpack.c.bf16 %v2423_v41, %v2421_v6  ;;  %v2376_v44 = vadd.f32 %v2375_v48, %v1578_v31  ;;  %v2427_v47 = vadd.f32 %v2426_v17, %v2374_v42 }
 0x234   : > { %v2377_v45 = vpop.f32.mrf.mxu0 }
 0x235   : > { %v2430_v46 = vpop.f32.mrf.mxu1  ;;  %2486 = vst [vmem:[%s4027_s29 + $0x18] sm:$0xff] %v2982_v43  ;;  %v2429_v49 = vadd.f32 %v2428_v50, %v2376_v44  ;;  %v2378_v51 = vadd.f32 %v2377_v45, %v1574_v30 }
 0x236   : > { %v2379_v52 = vpop.f32.mrf.mxu0 }
 0x237   : > { %v2984_v53 = vpack.c.bf16 %v2429_v49, %v2427_v47  ;;  %v2380_v54 = vadd.f32 %v2379_v52, %v1578_v31  ;;  %v2432_v55 = vpop.f32.mrf.mxu1  ;;  %v2431_v56 = vadd.f32 %v2430_v46, %v2378_v51 }
 0x239   : > { %2488 = vst [vmem:[%s4027_s29 + $0x28] sm:$0xff] %v2984_v53  ;;  %v2433_v57 = vadd.f32 %v2432_v55, %v2380_v54 }
 0x23b   : > { %v2986_v58 = vpack.c.bf16 %v2433_v57, %v2431_v56 }
 0x23d   : > { %2490 = vst [vmem:[%s4027_s29 + $0x38] sm:$0xff] %v2986_v58 }
 0x23e   : > { %3626 = shalt.err (!%p3623_p9)
}
 0x23f   : > { %s3627_s25 = scalar_lea.hbm %s4048_s7, 1024  ;;  %s3631_s12 = scalar_lea.hbm %s4099_s6, 2048 }
 0x240   : > { %p3628_p8 = scmp.ne.s32.totalorder %s4048_s7, %s3627_s25  ;;  %p3632_p0 = scmp.lt.s32.totalorder %s4048_s7, %s4099_s6 }
 0x241   : > { %p3633_p3 = scmp.lt.s32.totalorder %s3631_s12, %s3627_s25 }
 0x242   : > { %p3629_p10 = pnand %p3628_p8, %p4121_p2 }
 0x243   : > { %p3634_p1 = por %p3633_p3, %p3632_p0 }
 0x244   : > { %p3630_p11 = pneg %p3629_p10 }
 0x246   : > { %p3635_p4 = pnand %p3634_p1, %p3630_p11 }
 0x248   : > { %3638 = shalt.err (!%p3635_p4)
}
 0x249   : > { %3006 = dma.vmem_to_hbm [thread:$0]  (%p4121_p2), %s4041_s15, 1024, %s4048_s7, %s2497_s27, %s3698_s16, %s3698_s16, %s3699_s10  }
 0x24a PF: > { %s2543_s26 = sand.u32 1, %s3677_s21   ;;  %p4122_p6 = scmp.ne.s32.totalorder %s4107_s28, 0 }
 0x24b   : > { %p4123_p12 = scmp.ge.s32.totalorder %s3689_s24, 2  ;;  %s2544_s30 = scalar_lea.sflag [#allocation4], %s2543_s26 }
 0x24d   : > { %p3024_p5 = pnand %p4123_p12, %p4122_p6 }
 0x24f   : > { %p3025_p7 = pneg %p3024_p5 }
 0x251   : > { %3668 = dma.done.wait (%p3025_p7), %s2544_s30, 1024  }
 0x252   : > { %3670 = vsyncadd (%p3025_p7), %s2544_s30, 4294966272  ;;  %s2553_s8 = scalar_lea.sflag [#allocation12], %s2543_s26 }
 0x253   : > { %3672 = dma.done.wait (%p3025_p7), %s2553_s8, 1024  }
 0x254   : > { %3674 = vsyncadd (%p3025_p7), %s2553_s8, 4294966272  ;;  %p25_p2 = scmp.ge.s32.totalorder %s3822_s9, 4   ;;  %s4124_s21 = smov %s3681_s22 }
 0x255   : > { %s4125_s22 = smov %s3685_s23  ;;  %s4126_s23 = smov %s3832_s11 }
 0x256   : > { %s4127_s24 = smov %s3822_s9  ;;  %27 = sbr.rel (!%p25_p2) target bundleno = 9 (0x9), region = 114 }
 0x25b   :  { %2558 = vsyncpa [#allocation3], 1 }
 0x25c   :  { %2560 = vsyncpa [#allocation3 + $0x1], 1 }
 0x25d   :  { %2561 = vsyncpa [#allocation6], 1 }
 0x25e   :  { %2562 = vsyncpa [#allocation9], 1 }
 0x25f   :  { %2563 = vsyncpa [#allocation4], 1 }
 0x260   :  { %2565 = vsyncpa [#allocation4 + $0x1], 1 }
 0x261   :  { %2566 = vsyncpa [#allocation12], 1 }
 0x262   :  { %2568 = vsyncpa [#allocation12 + $0x1], 1 }

</bundles_post_ra>
